<compile_context>
chip_gen: v5e
topology: v5e:2x2
jax: 0.10.0
libtpu: 0.0.40
codegen_flags: <defaults>
</compile_context>

<pallas_src>
import functools

import jax
import jax.numpy as jnp
from jax import lax
from jax.experimental import pallas as pl
from jax.experimental.pallas import tpu as pltpu


def _msa_mha_kernel(x_ref, wq_ref, wk_ref, wv_ref, wo_ref, o_ref,
                    q_s, k_s, v_s, cat_b, cat_s, *,
                    n_head, head_dim, b_blk, seq_len, emb):
    """One grid step = one block of batch elements.

    x_ref:  (b_blk*L, E_pad) bf16  (batch-major rows)
    o_ref:  (L, b_blk*E_pad) f32   (lane-flattened (L, batch, E_pad) output slab)
    q_s/k_s/v_s: (b_blk*L, E_pad) bf16 scratch
    cat_b:  (L, E_pad) bf16 scratch   (per-batch concat of head outputs)
    cat_s:  (b_blk*L, E_pad) bf16 scratch (block-wide concat of head outputs)
    """
    L = seq_len
    e_pad = x_ref.shape[-1]

    # Fused projections over all b_blk*L rows (bf16 operands, f32 MXU accumulate),
    # staged straight into bf16 VMEM scratch.
    x = x_ref[...]
    q_s[...] = jnp.dot(x, wq_ref[...],
                       preferred_element_type=jnp.float32).astype(jnp.bfloat16)
    k_s[...] = jnp.dot(x, wk_ref[...],
                       preferred_element_type=jnp.float32).astype(jnp.bfloat16)
    v_s[...] = jnp.dot(x, wv_ref[...],
                       preferred_element_type=jnp.float32).astype(jnp.bfloat16)

    # Zero the concat buffer's padded lanes once so the full-width out-projection
    # never contracts against uninitialized VMEM (padded wo rows are zero, but
    # garbage * 0 could still be NaN).
    if emb != e_pad:
        cat_b[...] = jnp.zeros_like(cat_b)

    nt = (((1,), (1,)), ((), ()))   # contract last dims: q @ k.T

    def attend_one_batch(b, carry):
        row0 = pl.multiple_of(b * L, L)
        rows = pl.ds(row0, L)
        # TODO(synk): flash-style key tiling (online max/sum accumulators) before
        # L reaches the hundreds — the (L, L) f32 scores are materialized per head.
        for h in range(n_head):          # static, unrolled; heads are independent
            c0, c1 = h * head_dim, (h + 1) * head_dim
            qh = q_s[rows, c0:c1]                                   # (L, dh) bf16
            kh = k_s[rows, c0:c1]
            vh = v_s[rows, c0:c1]
            s = lax.dot_general(qh, kh, nt,
                                preferred_element_type=jnp.float32)  # (L, L) f32
            s = s - jnp.max(s, axis=-1, keepdims=True)
            p = jnp.exp(s)
            p = p * pl.reciprocal(jnp.sum(p, axis=-1, keepdims=True), approx=True)
            o_h = jnp.dot(p.astype(jnp.bfloat16), vh,
                          preferred_element_type=jnp.float32)        # (L, dh) f32
            cat_b[:, c0:c1] = o_h.astype(jnp.bfloat16)
        cat_s[rows, :] = cat_b[...]
        return carry

    lax.fori_loop(0, b_blk, attend_one_batch, 0)

    # One full-width (L, E_pad) @ (E_pad, E_pad) out-projection per batch element,
    # stored as a dense, 128-aligned lane slab of the (L, b_blk*E_pad) output block.
    for b in range(b_blk):
        out_b = jnp.dot(cat_s[b * L:(b + 1) * L, :], wo_ref[...],
                        preferred_element_type=jnp.float32)          # (L, E_pad)
        o_ref[:, b * e_pad:(b + 1) * e_pad] = out_b.astype(o_ref.dtype)


def _vmem_limit_bytes():
    """Per-generation VMEM limit: ~3/4 of physical (48 MiB v7x, 96 MiB v5e/v6e)."""
    try:
        cap = pltpu.get_tpu_info().vmem_capacity_bytes
    except Exception:
        cap = 64 << 20          # conservative fallback, safe on every generation
    return int(min(max(cap * 3 // 4, 32 << 20), 100 << 20))


def _pick_batch_block(N, L, e_pad, vmem_limit_bytes):
    """Largest legal batch block whose VMEM footprint fits the budget.

    Per-batch-element footprint (bytes):
      x block   bf16, double-buffered : 4 * L * e_pad
      out block f32,  double-buffered : 8 * L * e_pad
      q/k/v scratch bf16              : 6 * L * e_pad
      concat scratch bf16             : 2 * L * e_pad
    Fixed: 4 single-buffered (e_pad, e_pad) bf16 weights, per-batch concat buffer,
    a few live (L, L) f32 score/prob tiles, plus compiler headroom.
    """
    per_b = 20 * L * e_pad
    fixed = 8 * e_pad * e_pad + 2 * L * e_pad + 4 * L * L * 4 + (8 << 20)
    budget = max(vmem_limit_bytes - fixed, per_b)
    # Cap at N//2 so the grid has >=2 steps (both v7x TensorCores get work).
    blk = max(1, min(int(budget // per_b), N // 2 if N >= 2 else 1))

    def ok(b):
        # b must divide N; the (b*L, e_pad) input block needs b*L % 8 == 0 unless
        # it spans the whole flattened array.
        return N % b == 0 and ((b * L) % 8 == 0 or b == N)

    while blk > 1 and not ok(blk):
        blk -= 1
    if not ok(blk):
        blk = N                  # full-array block is always a legal fallback
    return blk


def msa_multihead_attention(X, params, n_head, *, b_blk=None):
    """X: (L, N, E). params: (wk, wq, wv, wq_in, wk_in, wv_in, wout), each (E, E).

    Returns (attn_output (L, N, E), None) — matching the torch module's forward
    with need_weights=False and dropout=0.0.
    """
    wk, wq, wv, wq_in, wk_in, wv_in, wout = params
    L, N, E = X.shape
    assert E % n_head == 0, "n_input must be divisible by n_head"
    dh = E // n_head

    # Algebraic fusion of the chained projections (once, outside the kernel):
    #   q = ((X @ wq.T) @ wq_in.T) * dh**-0.5 = X @ ((wq_in @ wq).T * dh**-0.5)
    wq_t = (wq_in @ wq).T * (dh ** -0.5)
    wk_t = (wk_in @ wk).T
    wv_t = (wv_in @ wv).T
    wo_t = wout.T

    # Lane-pad the embedding to a multiple of 128. Zero padding leaves numerics
    # unchanged: padded q/k/v lanes are never addressed by the head slices and the
    # padded wout rows/cols are zero.
    e_pad = pl.cdiv(E, 128) * 128
    pad = e_pad - E

    def _prep_w(w):
        if pad:
            w = jnp.pad(w, ((0, pad), (0, pad)))
        return w.astype(jnp.bfloat16)

    wq_t, wk_t, wv_t, wo_t = (_prep_w(w) for w in (wq_t, wk_t, wv_t, wo_t))

    # (L, N, E) -> (N*L, e_pad) bf16: batch-major rows so a block of batch elements
    # is one contiguous, sublane/lane-dense projection-LHS slab (no in-kernel reshape).
    xb = jnp.transpose(X, (1, 0, 2))
    if pad:
        xb = jnp.pad(xb, ((0, 0), (0, 0), (0, pad)))
    xb = xb.reshape(N * L, e_pad).astype(jnp.bfloat16)

    vmem_limit = _vmem_limit_bytes()
    if b_blk is None:
        b_blk = _pick_batch_block(N, L, e_pad, vmem_limit)
    grid = (N // b_blk,)

    kernel = functools.partial(_msa_mha_kernel, n_head=n_head, head_dim=dh,
                               b_blk=b_blk, seq_len=L, emb=E)

    x_spec = pl.BlockSpec((b_blk * L, e_pad), lambda g: (g, 0))
    # Output is lane-flattened (L, N*e_pad): each grid step owns a dense,
    # 128-aligned column slab, and the wrapper reshape back to (L, N, e_pad) is free.
    o_spec = pl.BlockSpec((L, b_blk * e_pad), lambda g: (0, g))
    scratch = [
        pltpu.VMEM((b_blk * L, e_pad), jnp.bfloat16),   # q
        pltpu.VMEM((b_blk * L, e_pad), jnp.bfloat16),   # k
        pltpu.VMEM((b_blk * L, e_pad), jnp.bfloat16),   # v
        pltpu.VMEM((L, e_pad), jnp.bfloat16),           # per-batch head concat
        pltpu.VMEM((b_blk * L, e_pad), jnp.bfloat16),   # block-wide head concat
    ]
    cparams = pltpu.CompilerParams(
        dimension_semantics=("parallel",),
        vmem_limit_bytes=vmem_limit,
    )

    def _run(weight_spec):
        return pl.pallas_call(
            kernel,
            out_shape=jax.ShapeDtypeStruct((L, N * e_pad), X.dtype),
            grid=grid,
            in_specs=[x_spec] + [weight_spec] * 4,
            out_specs=o_spec,
            scratch_shapes=scratch,
            compiler_params=cparams,
        )(xb, wq_t, wk_t, wv_t, wo_t)

    try:
        # Grid-invariant weights: constant index map avoids per-step re-fetch and
        # Buffered(1) drops the second pipeline buffer (halves their VMEM share).
        out = _run(pl.BlockSpec((e_pad, e_pad), lambda g: (0, 0),
                                pipeline_mode=pl.Buffered(1)))
    except Exception:
        # Fallback for Pallas builds without single-buffered pipeline_mode.
        out = _run(pl.BlockSpec((e_pad, e_pad), lambda g: (0, 0)))

    # Free metadata reshape to (L, N, e_pad); only the lane un-padding slice remains
    # (a no-op when E is already a multiple of 128). No post-kernel transpose.
    out = out.reshape(L, N, e_pad)[:, :, :E]
    return out, None


def _reference(X, params, n_head):
    """Pure-JAX f32 reference mirroring torch semantics, for a correctness check."""
    wk, wq, wv, wq_in, wk_in, wv_in, wout = params
    L, N, E = X.shape
    dh = E // n_head
    K = X @ wk.T
    Q = X @ wq.T
    V = X @ wv.T
    q = (Q @ wq_in.T) * (dh ** -0.5)
    k = K @ wk_in.T
    v = V @ wv_in.T

    def split(t):
        return t.reshape(L, N, n_head, dh).transpose(1, 2, 0, 3)   # (N, H, L, dh)

    qh, kh, vh = split(q), split(k), split(v)
    s = jnp.einsum('nhld,nhmd->nhlm', qh, kh)
    p = jax.nn.softmax(s, axis=-1)
    o = jnp.einsum('nhlm,nhmd->nhld', p, vh)
    o = o.transpose(2, 0, 1, 3).reshape(L, N, E)
    return o @ wout.T


if __name__ == "__main__":
    L, N, E, H = 8, 4, 32, 4   # seq, batch, n_input, n_head

    key = jax.random.PRNGKey(0)
    keys = jax.random.split(key, 8)
    X = jax.random.normal(keys[0], (L, N, E), dtype=jnp.float32)

    # Deterministic parameter init (shapes from the torch module's __init__):
    # toK/toQ/toV: (E, E) each; MHA in_proj split as 3 x (E, E); out_proj: (E, E).
    def w(k):
        return jax.random.normal(k, (E, E), dtype=jnp.float32) * 0.1

    params = tuple(w(k) for k in keys[1:8])  # wk, wq, wv, wq_in, wk_in, wv_in, wout

    out, attn_weights = msa_multihead_attention(X, params, H)
    out = jax.block_until_ready(out)

    ref = _reference(X, params, H)
    assert out.shape == (L, N, E)
    assert attn_weights is None
    # Tolerance loosened for bf16 matmul inputs + approximate reciprocal.
    max_err = float(jnp.max(jnp.abs(out - ref)))
    assert jnp.allclose(out, ref, rtol=3e-2, atol=3e-2), \
        f"mismatch vs reference (max abs err {max_err})"

    print("KERNEL_OK")
</pallas_src>

<mosaic_0001>
module attributes {stable_mosaic.version = 11 : i64} {
  func.func @_msa_mha_kernel(%arg0: i32, %arg1: memref<16x128xbf16, #tpu.memory_space<vmem>>, %arg2: memref<128x128xbf16, #tpu.memory_space<vmem>>, %arg3: memref<128x128xbf16, #tpu.memory_space<vmem>>, %arg4: memref<128x128xbf16, #tpu.memory_space<vmem>>, %arg5: memref<128x128xbf16, #tpu.memory_space<vmem>>, %arg6: memref<8x256xf32, #tpu.memory_space<vmem>>, %arg7: memref<16x128xbf16, #tpu.memory_space<vmem>>, %arg8: memref<16x128xbf16, #tpu.memory_space<vmem>>, %arg9: memref<16x128xbf16, #tpu.memory_space<vmem>>, %arg10: memref<8x128xbf16, #tpu.memory_space<vmem>>, %arg11: memref<16x128xbf16, #tpu.memory_space<vmem>>) attributes {dimension_semantics = [#tpu.dimension_semantics<parallel>], iteration_bounds = array<i64: 2>, scalar_prefetch = 0 : i64, scratch_operands = 5 : i64, tpu.core_type = #tpu.core_type<tc>, window_params = [{transform_indices = @transform_0, window_bounds = array<i64: 16, 128>}, {pipeline_mode = #tpu.pipeline_mode<synchronous>, transform_indices = @transform_1, window_bounds = array<i64: 128, 128>}, {pipeline_mode = #tpu.pipeline_mode<synchronous>, transform_indices = @transform_2, window_bounds = array<i64: 128, 128>}, {pipeline_mode = #tpu.pipeline_mode<synchronous>, transform_indices = @transform_3, window_bounds = array<i64: 128, 128>}, {pipeline_mode = #tpu.pipeline_mode<synchronous>, transform_indices = @transform_4, window_bounds = array<i64: 128, 128>}, {transform_indices = @transform_5, window_bounds = array<i64: 8, 256>}]} {
    %c0 = arith.constant 0 : index
    %c0_0 = arith.constant 0 : index
    %0 = vector.load %arg1[%c0, %c0_0] : memref<16x128xbf16, #tpu.memory_space<vmem>>, vector<16x128xbf16>
    %c0_1 = arith.constant 0 : index
    %c0_2 = arith.constant 0 : index
    %1 = vector.load %arg2[%c0_1, %c0_2] : memref<128x128xbf16, #tpu.memory_space<vmem>>, vector<128x128xbf16>
    %cst = arith.constant dense<0.000000e+00> : vector<16x128xf32>
    %2 = tpu.matmul %0, %1, %cst {dimension_numbers = #tpu.dot_dimension_numbers<[1], [0], [0], [1], [0, 0, 1, 1], [], []>} : vector<16x128xbf16>, vector<128x128xbf16>, vector<16x128xf32> -> vector<16x128xf32>
    %3 = arith.truncf %2 : vector<16x128xf32> to vector<16x128xbf16>
    %c0_3 = arith.constant 0 : index
    %c0_4 = arith.constant 0 : index
    %4 = vector.load %arg7[%c0_3, %c0_4] : memref<16x128xbf16, #tpu.memory_space<vmem>>, vector<16x128xbf16>
    tpu.vector_store %arg7[%c0_3, %c0_4], %3 {strides = array<i32>} : memref<16x128xbf16, #tpu.memory_space<vmem>>, vector<16x128xbf16>,
    %c0_5 = arith.constant 0 : index
    %c0_6 = arith.constant 0 : index
    %5 = vector.load %arg3[%c0_5, %c0_6] : memref<128x128xbf16, #tpu.memory_space<vmem>>, vector<128x128xbf16>
    %cst_7 = arith.constant dense<0.000000e+00> : vector<16x128xf32>
    %6 = tpu.matmul %0, %5, %cst_7 {dimension_numbers = #tpu.dot_dimension_numbers<[1], [0], [0], [1], [0, 0, 1, 1], [], []>} : vector<16x128xbf16>, vector<128x128xbf16>, vector<16x128xf32> -> vector<16x128xf32>
    %7 = arith.truncf %6 : vector<16x128xf32> to vector<16x128xbf16>
    %c0_8 = arith.constant 0 : index
    %c0_9 = arith.constant 0 : index
    %8 = vector.load %arg8[%c0_8, %c0_9] : memref<16x128xbf16, #tpu.memory_space<vmem>>, vector<16x128xbf16>
    tpu.vector_store %arg8[%c0_8, %c0_9], %7 {strides = array<i32>} : memref<16x128xbf16, #tpu.memory_space<vmem>>, vector<16x128xbf16>,
    %c0_10 = arith.constant 0 : index
    %c0_11 = arith.constant 0 : index
    %9 = vector.load %arg4[%c0_10, %c0_11] : memref<128x128xbf16, #tpu.memory_space<vmem>>, vector<128x128xbf16>
    %cst_12 = arith.constant dense<0.000000e+00> : vector<16x128xf32>
    %10 = tpu.matmul %0, %9, %cst_12 {dimension_numbers = #tpu.dot_dimension_numbers<[1], [0], [0], [1], [0, 0, 1, 1], [], []>} : vector<16x128xbf16>, vector<128x128xbf16>, vector<16x128xf32> -> vector<16x128xf32>
    %11 = arith.truncf %10 : vector<16x128xf32> to vector<16x128xbf16>
    %c0_13 = arith.constant 0 : index
    %c0_14 = arith.constant 0 : index
    %12 = vector.load %arg9[%c0_13, %c0_14] : memref<16x128xbf16, #tpu.memory_space<vmem>>, vector<16x128xbf16>
    tpu.vector_store %arg9[%c0_13, %c0_14], %11 {strides = array<i32>} : memref<16x128xbf16, #tpu.memory_space<vmem>>, vector<16x128xbf16>,
    %cst_15 = arith.constant 0.000000e+00 : bf16
    %13 = vector.broadcast %cst_15 : bf16 to vector<8x128xbf16>
    %c0_16 = arith.constant 0 : index
    %c0_17 = arith.constant 0 : index
    %14 = vector.load %arg10[%c0_16, %c0_17] : memref<8x128xbf16, #tpu.memory_space<vmem>>, vector<8x128xbf16>
    tpu.vector_store %arg10[%c0_16, %c0_17], %13 {strides = array<i32>} : memref<8x128xbf16, #tpu.memory_space<vmem>>, vector<8x128xbf16>,
    %c0_i32 = arith.constant 0 : i32
    %c2_i32 = arith.constant 2 : i32
    %15 = arith.addi %c0_i32, %c2_i32 : i32
    %c1_i32 = arith.constant 1 : i32
    scf.for %arg12 = %c0_i32 to %15 step %c1_i32  : i32 {
      %c8_i32 = arith.constant 8 : i32
      %24 = arith.muli %arg12, %c8_i32 : i32
      %25 = tpu.assume_multiple %24, 8 : i32
      %26 = arith.index_cast %25 : i32 to index
      %c0_31 = arith.constant 0 : index
      %27 = vector.load %arg7[%26, %c0_31] : memref<16x128xbf16, #tpu.memory_space<vmem>>, vector<8x8xbf16>
      %28 = arith.index_cast %25 : i32 to index
      %c0_32 = arith.constant 0 : index
      %29 = vector.load %arg8[%28, %c0_32] : memref<16x128xbf16, #tpu.memory_space<vmem>>, vector<8x8xbf16>
      %30 = arith.index_cast %25 : i32 to index
      %c0_33 = arith.constant 0 : index
      %31 = vector.load %arg9[%30, %c0_33] : memref<16x128xbf16, #tpu.memory_space<vmem>>, vector<8x8xbf16>
      %cst_34 = arith.constant dense<0.000000e+00> : vector<8x8xf32>
      %32 = tpu.matmul %27, %29, %cst_34 {dimension_numbers = #tpu.dot_dimension_numbers<[1], [1], [0], [0], [0, 0, 1, 0], [], []>} : vector<8x8xbf16>, vector<8x8xbf16>, vector<8x8xf32> -> vector<8x8xf32>
      %cst_35 = arith.constant dense<0xFF800000> : vector<8xf32>
      %33 = vector.multi_reduction <maximumf>, %32, %cst_35 [1] : vector<8x8xf32> to vector<8xf32>
      %34 = vector.shape_cast %33 : vector<8xf32> to vector<8x1xf32>
      %35 = vector.broadcast %34 : vector<8x1xf32> to vector<8x8xf32>
      %36 = arith.subf %32, %35 : vector<8x8xf32>
      %37 = math.exp %36 : vector<8x8xf32>
      %cst_36 = arith.constant dense<0.000000e+00> : vector<8xf32>
      %38 = vector.multi_reduction <add>, %37, %cst_36 [1] : vector<8x8xf32> to vector<8xf32>
      %39 = vector.shape_cast %38 : vector<8xf32> to vector<8x1xf32>
      %40 = tpu.reciprocal %39 {approx = true} : vector<8x1xf32> -> vector<8x1xf32>
      %41 = vector.broadcast %40 : vector<8x1xf32> to vector<8x8xf32>
      %42 = arith.mulf %37, %41 : vector<8x8xf32>
      %43 = arith.truncf %42 : vector<8x8xf32> to vector<8x8xbf16>
      %cst_37 = arith.constant dense<0.000000e+00> : vector<8x8xf32>
      %44 = tpu.matmul %43, %31, %cst_37 {dimension_numbers = #tpu.dot_dimension_numbers<[1], [0], [0], [1], [0, 0, 1, 1], [], []>} : vector<8x8xbf16>, vector<8x8xbf16>, vector<8x8xf32> -> vector<8x8xf32>
      %45 = arith.truncf %44 : vector<8x8xf32> to vector<8x8xbf16>
      %c0_38 = arith.constant 0 : index
      %c0_39 = arith.constant 0 : index
      %46 = vector.load %arg10[%c0_38, %c0_39] : memref<8x128xbf16, #tpu.memory_space<vmem>>, vector<8x8xbf16>
      tpu.vector_store %arg10[%c0_38, %c0_39], %45 {strides = array<i32>} : memref<8x128xbf16, #tpu.memory_space<vmem>>, vector<8x8xbf16>,
      %47 = arith.index_cast %25 : i32 to index
      %c8_40 = arith.constant 8 : index
      %48 = vector.load %arg7[%47, %c8_40] : memref<16x128xbf16, #tpu.memory_space<vmem>>, vector<8x8xbf16>
      %49 = arith.index_cast %25 : i32 to index
      %c8_41 = arith.constant 8 : index
      %50 = vector.load %arg8[%49, %c8_41] : memref<16x128xbf16, #tpu.memory_space<vmem>>, vector<8x8xbf16>
      %51 = arith.index_cast %25 : i32 to index
      %c8_42 = arith.constant 8 : index
      %52 = vector.load %arg9[%51, %c8_42] : memref<16x128xbf16, #tpu.memory_space<vmem>>, vector<8x8xbf16>
      %cst_43 = arith.constant dense<0.000000e+00> : vector<8x8xf32>
      %53 = tpu.matmul %48, %50, %cst_43 {dimension_numbers = #tpu.dot_dimension_numbers<[1], [1], [0], [0], [0, 0, 1, 0], [], []>} : vector<8x8xbf16>, vector<8x8xbf16>, vector<8x8xf32> -> vector<8x8xf32>
      %cst_44 = arith.constant dense<0xFF800000> : vector<8xf32>
      %54 = vector.multi_reduction <maximumf>, %53, %cst_44 [1] : vector<8x8xf32> to vector<8xf32>
      %55 = vector.shape_cast %54 : vector<8xf32> to vector<8x1xf32>
      %56 = vector.broadcast %55 : vector<8x1xf32> to vector<8x8xf32>
      %57 = arith.subf %53, %56 : vector<8x8xf32>
      %58 = math.exp %57 : vector<8x8xf32>
      %cst_45 = arith.constant dense<0.000000e+00> : vector<8xf32>
      %59 = vector.multi_reduction <add>, %58, %cst_45 [1] : vector<8x8xf32> to vector<8xf32>
      %60 = vector.shape_cast %59 : vector<8xf32> to vector<8x1xf32>
      %61 = tpu.reciprocal %60 {approx = true} : vector<8x1xf32> -> vector<8x1xf32>
      %62 = vector.broadcast %61 : vector<8x1xf32> to vector<8x8xf32>
      %63 = arith.mulf %58, %62 : vector<8x8xf32>
      %64 = arith.truncf %63 : vector<8x8xf32> to vector<8x8xbf16>
      %cst_46 = arith.constant dense<0.000000e+00> : vector<8x8xf32>
      %65 = tpu.matmul %64, %52, %cst_46 {dimension_numbers = #tpu.dot_dimension_numbers<[1], [0], [0], [1], [0, 0, 1, 1], [], []>} : vector<8x8xbf16>, vector<8x8xbf16>, vector<8x8xf32> -> vector<8x8xf32>
      %66 = arith.truncf %65 : vector<8x8xf32> to vector<8x8xbf16>
      %c0_47 = arith.constant 0 : index
      %c8_48 = arith.constant 8 : index
      %67 = vector.load %arg10[%c0_47, %c8_48] : memref<8x128xbf16, #tpu.memory_space<vmem>>, vector<8x8xbf16>
      tpu.vector_store %arg10[%c0_47, %c8_48], %66 {strides = array<i32>} : memref<8x128xbf16, #tpu.memory_space<vmem>>, vector<8x8xbf16>,
      %68 = arith.index_cast %25 : i32 to index
      %c16 = arith.constant 16 : index
      %69 = vector.load %arg7[%68, %c16] : memref<16x128xbf16, #tpu.memory_space<vmem>>, vector<8x8xbf16>
      %70 = arith.index_cast %25 : i32 to index
      %c16_49 = arith.constant 16 : index
      %71 = vector.load %arg8[%70, %c16_49] : memref<16x128xbf16, #tpu.memory_space<vmem>>, vector<8x8xbf16>
      %72 = arith.index_cast %25 : i32 to index
      %c16_50 = arith.constant 16 : index
      %73 = vector.load %arg9[%72, %c16_50] : memref<16x128xbf16, #tpu.memory_space<vmem>>, vector<8x8xbf16>
      %cst_51 = arith.constant dense<0.000000e+00> : vector<8x8xf32>
      %74 = tpu.matmul %69, %71, %cst_51 {dimension_numbers = #tpu.dot_dimension_numbers<[1], [1], [0], [0], [0, 0, 1, 0], [], []>} : vector<8x8xbf16>, vector<8x8xbf16>, vector<8x8xf32> -> vector<8x8xf32>
      %cst_52 = arith.constant dense<0xFF800000> : vector<8xf32>
      %75 = vector.multi_reduction <maximumf>, %74, %cst_52 [1] : vector<8x8xf32> to vector<8xf32>
      %76 = vector.shape_cast %75 : vector<8xf32> to vector<8x1xf32>
      %77 = vector.broadcast %76 : vector<8x1xf32> to vector<8x8xf32>
      %78 = arith.subf %74, %77 : vector<8x8xf32>
      %79 = math.exp %78 : vector<8x8xf32>
      %cst_53 = arith.constant dense<0.000000e+00> : vector<8xf32>
      %80 = vector.multi_reduction <add>, %79, %cst_53 [1] : vector<8x8xf32> to vector<8xf32>
      %81 = vector.shape_cast %80 : vector<8xf32> to vector<8x1xf32>
      %82 = tpu.reciprocal %81 {approx = true} : vector<8x1xf32> -> vector<8x1xf32>
      %83 = vector.broadcast %82 : vector<8x1xf32> to vector<8x8xf32>
      %84 = arith.mulf %79, %83 : vector<8x8xf32>
      %85 = arith.truncf %84 : vector<8x8xf32> to vector<8x8xbf16>
      %cst_54 = arith.constant dense<0.000000e+00> : vector<8x8xf32>
      %86 = tpu.matmul %85, %73, %cst_54 {dimension_numbers = #tpu.dot_dimension_numbers<[1], [0], [0], [1], [0, 0, 1, 1], [], []>} : vector<8x8xbf16>, vector<8x8xbf16>, vector<8x8xf32> -> vector<8x8xf32>
      %87 = arith.truncf %86 : vector<8x8xf32> to vector<8x8xbf16>
      %c0_55 = arith.constant 0 : index
      %c16_56 = arith.constant 16 : index
      %88 = vector.load %arg10[%c0_55, %c16_56] : memref<8x128xbf16, #tpu.memory_space<vmem>>, vector<8x8xbf16>
      tpu.vector_store %arg10[%c0_55, %c16_56], %87 {strides = array<i32>} : memref<8x128xbf16, #tpu.memory_space<vmem>>, vector<8x8xbf16>,
      %89 = arith.index_cast %25 : i32 to index
      %c24 = arith.constant 24 : index
      %90 = vector.load %arg7[%89, %c24] : memref<16x128xbf16, #tpu.memory_space<vmem>>, vector<8x8xbf16>
      %91 = arith.index_cast %25 : i32 to index
      %c24_57 = arith.constant 24 : index
      %92 = vector.load %arg8[%91, %c24_57] : memref<16x128xbf16, #tpu.memory_space<vmem>>, vector<8x8xbf16>
      %93 = arith.index_cast %25 : i32 to index
      %c24_58 = arith.constant 24 : index
      %94 = vector.load %arg9[%93, %c24_58] : memref<16x128xbf16, #tpu.memory_space<vmem>>, vector<8x8xbf16>
      %cst_59 = arith.constant dense<0.000000e+00> : vector<8x8xf32>
      %95 = tpu.matmul %90, %92, %cst_59 {dimension_numbers = #tpu.dot_dimension_numbers<[1], [1], [0], [0], [0, 0, 1, 0], [], []>} : vector<8x8xbf16>, vector<8x8xbf16>, vector<8x8xf32> -> vector<8x8xf32>
      %cst_60 = arith.constant dense<0xFF800000> : vector<8xf32>
      %96 = vector.multi_reduction <maximumf>, %95, %cst_60 [1] : vector<8x8xf32> to vector<8xf32>
      %97 = vector.shape_cast %96 : vector<8xf32> to vector<8x1xf32>
      %98 = vector.broadcast %97 : vector<8x1xf32> to vector<8x8xf32>
      %99 = arith.subf %95, %98 : vector<8x8xf32>
      %100 = math.exp %99 : vector<8x8xf32>
      %cst_61 = arith.constant dense<0.000000e+00> : vector<8xf32>
      %101 = vector.multi_reduction <add>, %100, %cst_61 [1] : vector<8x8xf32> to vector<8xf32>
      %102 = vector.shape_cast %101 : vector<8xf32> to vector<8x1xf32>
      %103 = tpu.reciprocal %102 {approx = true} : vector<8x1xf32> -> vector<8x1xf32>
      %104 = vector.broadcast %103 : vector<8x1xf32> to vector<8x8xf32>
      %105 = arith.mulf %100, %104 : vector<8x8xf32>
      %106 = arith.truncf %105 : vector<8x8xf32> to vector<8x8xbf16>
      %cst_62 = arith.constant dense<0.000000e+00> : vector<8x8xf32>
      %107 = tpu.matmul %106, %94, %cst_62 {dimension_numbers = #tpu.dot_dimension_numbers<[1], [0], [0], [1], [0, 0, 1, 1], [], []>} : vector<8x8xbf16>, vector<8x8xbf16>, vector<8x8xf32> -> vector<8x8xf32>
      %108 = arith.truncf %107 : vector<8x8xf32> to vector<8x8xbf16>
      %c0_63 = arith.constant 0 : index
      %c24_64 = arith.constant 24 : index
      %109 = vector.load %arg10[%c0_63, %c24_64] : memref<8x128xbf16, #tpu.memory_space<vmem>>, vector<8x8xbf16>
      tpu.vector_store %arg10[%c0_63, %c24_64], %108 {strides = array<i32>} : memref<8x128xbf16, #tpu.memory_space<vmem>>, vector<8x8xbf16>,
      %c0_65 = arith.constant 0 : index
      %c0_66 = arith.constant 0 : index
      %110 = vector.load %arg10[%c0_65, %c0_66] : memref<8x128xbf16, #tpu.memory_space<vmem>>, vector<8x128xbf16>
      %111 = arith.index_cast %25 : i32 to index
      %c0_67 = arith.constant 0 : index
      %112 = vector.load %arg11[%111, %c0_67] : memref<16x128xbf16, #tpu.memory_space<vmem>>, vector<8x128xbf16>
      tpu.vector_store %arg11[%111, %c0_67], %110 {strides = array<i32>} : memref<16x128xbf16, #tpu.memory_space<vmem>>, vector<8x128xbf16>,
    }
    %c2_i32_18 = arith.constant 2 : i32
    %c0_19 = arith.constant 0 : index
    %c0_20 = arith.constant 0 : index
    %16 = vector.load %arg11[%c0_19, %c0_20] : memref<16x128xbf16, #tpu.memory_space<vmem>>, vector<8x128xbf16>
    %c0_21 = arith.constant 0 : index
    %c0_22 = arith.constant 0 : index
    %17 = vector.load %arg5[%c0_21, %c0_22] : memref<128x128xbf16, #tpu.memory_space<vmem>>, vector<128x128xbf16>
    %cst_23 = arith.constant dense<0.000000e+00> : vector<8x128xf32>
    %18 = tpu.matmul %16, %17, %cst_23 {dimension_numbers = #tpu.dot_dimension_numbers<[1], [0], [0], [1], [0, 0, 1, 1], [], []>} : vector<8x128xbf16>, vector<128x128xbf16>, vector<8x128xf32> -> vector<8x128xf32>
    %c0_24 = arith.constant 0 : index
    %c0_25 = arith.constant 0 : index
    %19 = vector.load %arg6[%c0_24, %c0_25] : memref<8x256xf32, #tpu.memory_space<vmem>>, vector<8x128xf32>
    tpu.vector_store %arg6[%c0_24, %c0_25], %18 {strides = array<i32>} : memref<8x256xf32, #tpu.memory_space<vmem>>, vector<8x128xf32>,
    %c8 = arith.constant 8 : index
    %c0_26 = arith.constant 0 : index
    %20 = vector.load %arg11[%c8, %c0_26] : memref<16x128xbf16, #tpu.memory_space<vmem>>, vector<8x128xbf16>
    %c0_27 = arith.constant 0 : index
    %c0_28 = arith.constant 0 : index
    %21 = vector.load %arg5[%c0_27, %c0_28] : memref<128x128xbf16, #tpu.memory_space<vmem>>, vector<128x128xbf16>
    %cst_29 = arith.constant dense<0.000000e+00> : vector<8x128xf32>
    %22 = tpu.matmul %20, %21, %cst_29 {dimension_numbers = #tpu.dot_dimension_numbers<[1], [0], [0], [1], [0, 0, 1, 1], [], []>} : vector<8x128xbf16>, vector<128x128xbf16>, vector<8x128xf32> -> vector<8x128xf32>
    %c0_30 = arith.constant 0 : index
    %c128 = arith.constant 128 : index
    %23 = vector.load %arg6[%c0_30, %c128] : memref<8x256xf32, #tpu.memory_space<vmem>>, vector<8x128xf32>
    tpu.vector_store %arg6[%c0_30, %c128], %22 {strides = array<i32>} : memref<8x256xf32, #tpu.memory_space<vmem>>, vector<8x128xf32>,
    return
  }
  func.func @transform_0(%arg0: i32) -> (i32, i32) {
    %c0_i32 = arith.constant 0 : i32
    %c0_i32_0 = arith.constant 0 : i32
    return %arg0, %c0_i32 : i32, i32
  }
  func.func @transform_1(%arg0: i32) -> (i32, i32) {
    %c0_i32 = arith.constant 0 : i32
    %c0_i32_0 = arith.constant 0 : i32
    %c0_i32_1 = arith.constant 0 : i32
    return %c0_i32, %c0_i32_0 : i32, i32
  }
  func.func @transform_2(%arg0: i32) -> (i32, i32) {
    %c0_i32 = arith.constant 0 : i32
    %c0_i32_0 = arith.constant 0 : i32
    %c0_i32_1 = arith.constant 0 : i32
    return %c0_i32, %c0_i32_0 : i32, i32
  }
  func.func @transform_3(%arg0: i32) -> (i32, i32) {
    %c0_i32 = arith.constant 0 : i32
    %c0_i32_0 = arith.constant 0 : i32
    %c0_i32_1 = arith.constant 0 : i32
    return %c0_i32, %c0_i32_0 : i32, i32
  }
  func.func @transform_4(%arg0: i32) -> (i32, i32) {
    %c0_i32 = arith.constant 0 : i32
    %c0_i32_0 = arith.constant 0 : i32
    %c0_i32_1 = arith.constant 0 : i32
    return %c0_i32, %c0_i32_0 : i32, i32
  }
  func.func @transform_5(%arg0: i32) -> (i32, i32) {
    %c0_i32 = arith.constant 0 : i32
    %c0_i32_0 = arith.constant 0 : i32
    return %c0_i32, %arg0 : i32, i32
  }
}

module attributes {stable_mosaic.version = 11 : i64} {
  func.func @_msa_mha_kernel(%arg0: i32, %arg1: memref<16x128xbf16, #tpu.memory_space<vmem>>, %arg2: memref<128x128xbf16, #tpu.memory_space<vmem>>, %arg3: memref<128x128xbf16, #tpu.memory_space<vmem>>, %arg4: memref<128x128xbf16, #tpu.memory_space<vmem>>, %arg5: memref<128x128xbf16, #tpu.memory_space<vmem>>, %arg6: memref<8x256xf32, #tpu.memory_space<vmem>>, %arg7: memref<16x128xbf16, #tpu.memory_space<vmem>>, %arg8: memref<16x128xbf16, #tpu.memory_space<vmem>>, %arg9: memref<16x128xbf16, #tpu.memory_space<vmem>>, %arg10: memref<8x128xbf16, #tpu.memory_space<vmem>>, %arg11: memref<16x128xbf16, #tpu.memory_space<vmem>>) attributes {dimension_semantics = [#tpu.dimension_semantics<parallel>], iteration_bounds = array<i64: 2>, scalar_prefetch = 0 : i64, scratch_operands = 5 : i64, tpu.core_type = #tpu.core_type<tc>, window_params = [{transform_indices = @transform_0, window_bounds = array<i64: 16, 128>}, {pipeline_mode = #tpu.pipeline_mode<synchronous>, transform_indices = @transform_1, window_bounds = array<i64: 128, 128>}, {pipeline_mode = #tpu.pipeline_mode<synchronous>, transform_indices = @transform_2, window_bounds = array<i64: 128, 128>}, {pipeline_mode = #tpu.pipeline_mode<synchronous>, transform_indices = @transform_3, window_bounds = array<i64: 128, 128>}, {pipeline_mode = #tpu.pipeline_mode<synchronous>, transform_indices = @transform_4, window_bounds = array<i64: 128, 128>}, {transform_indices = @transform_5, window_bounds = array<i64: 8, 256>}]} {
    %c0 = arith.constant 0 : index
    %c0_0 = arith.constant 0 : index
    %0 = vector.load %arg1[%c0, %c0_0] : memref<16x128xbf16, #tpu.memory_space<vmem>>, vector<16x128xbf16>
    %c0_1 = arith.constant 0 : index
    %c0_2 = arith.constant 0 : index
    %1 = vector.load %arg2[%c0_1, %c0_2] : memref<128x128xbf16, #tpu.memory_space<vmem>>, vector<128x128xbf16>
    %cst = arith.constant dense<0.000000e+00> : vector<16x128xf32>
    %2 = tpu.matmul %0, %1, %cst {dimension_numbers = #tpu.dot_dimension_numbers<[1], [0], [0], [1], [0, 0, 1, 1], [], []>} : vector<16x128xbf16>, vector<128x128xbf16>, vector<16x128xf32> -> vector<16x128xf32>
    %3 = arith.truncf %2 : vector<16x128xf32> to vector<16x128xbf16>
    %c0_3 = arith.constant 0 : index
    %c0_4 = arith.constant 0 : index
    %4 = vector.load %arg7[%c0_3, %c0_4] : memref<16x128xbf16, #tpu.memory_space<vmem>>, vector<16x128xbf16>
    tpu.vector_store %arg7[%c0_3, %c0_4], %3 {strides = array<i32>} : memref<16x128xbf16, #tpu.memory_space<vmem>>, vector<16x128xbf16>,
    %c0_5 = arith.constant 0 : index
    %c0_6 = arith.constant 0 : index
    %5 = vector.load %arg3[%c0_5, %c0_6] : memref<128x128xbf16, #tpu.memory_space<vmem>>, vector<128x128xbf16>
    %cst_7 = arith.constant dense<0.000000e+00> : vector<16x128xf32>
    %6 = tpu.matmul %0, %5, %cst_7 {dimension_numbers = #tpu.dot_dimension_numbers<[1], [0], [0], [1], [0, 0, 1, 1], [], []>} : vector<16x128xbf16>, vector<128x128xbf16>, vector<16x128xf32> -> vector<16x128xf32>
    %7 = arith.truncf %6 : vector<16x128xf32> to vector<16x128xbf16>
    %c0_8 = arith.constant 0 : index
    %c0_9 = arith.constant 0 : index
    %8 = vector.load %arg8[%c0_8, %c0_9] : memref<16x128xbf16, #tpu.memory_space<vmem>>, vector<16x128xbf16>
    tpu.vector_store %arg8[%c0_8, %c0_9], %7 {strides = array<i32>} : memref<16x128xbf16, #tpu.memory_space<vmem>>, vector<16x128xbf16>,
    %c0_10 = arith.constant 0 : index
    %c0_11 = arith.constant 0 : index
    %9 = vector.load %arg4[%c0_10, %c0_11] : memref<128x128xbf16, #tpu.memory_space<vmem>>, vector<128x128xbf16>
    %cst_12 = arith.constant dense<0.000000e+00> : vector<16x128xf32>
    %10 = tpu.matmul %0, %9, %cst_12 {dimension_numbers = #tpu.dot_dimension_numbers<[1], [0], [0], [1], [0, 0, 1, 1], [], []>} : vector<16x128xbf16>, vector<128x128xbf16>, vector<16x128xf32> -> vector<16x128xf32>
    %11 = arith.truncf %10 : vector<16x128xf32> to vector<16x128xbf16>
    %c0_13 = arith.constant 0 : index
    %c0_14 = arith.constant 0 : index
    %12 = vector.load %arg9[%c0_13, %c0_14] : memref<16x128xbf16, #tpu.memory_space<vmem>>, vector<16x128xbf16>
    tpu.vector_store %arg9[%c0_13, %c0_14], %11 {strides = array<i32>} : memref<16x128xbf16, #tpu.memory_space<vmem>>, vector<16x128xbf16>,
    %cst_15 = arith.constant 0.000000e+00 : bf16
    %13 = vector.broadcast %cst_15 : bf16 to vector<8x128xbf16>
    %c0_16 = arith.constant 0 : index
    %c0_17 = arith.constant 0 : index
    %14 = vector.load %arg10[%c0_16, %c0_17] : memref<8x128xbf16, #tpu.memory_space<vmem>>, vector<8x128xbf16>
    tpu.vector_store %arg10[%c0_16, %c0_17], %13 {strides = array<i32>} : memref<8x128xbf16, #tpu.memory_space<vmem>>, vector<8x128xbf16>,
    %c0_i32 = arith.constant 0 : i32
    %c2_i32 = arith.constant 2 : i32
    %15 = arith.addi %c0_i32, %c2_i32 : i32
    %c1_i32 = arith.constant 1 : i32
    scf.for %arg12 = %c0_i32 to %15 step %c1_i32  : i32 {
      %c8_i32 = arith.constant 8 : i32
      %24 = arith.muli %arg12, %c8_i32 : i32
      %25 = tpu.assume_multiple %24, 8 : i32
      %26 = arith.index_cast %25 : i32 to index
      %c0_31 = arith.constant 0 : index
      %27 = vector.load %arg7[%26, %c0_31] : memref<16x128xbf16, #tpu.memory_space<vmem>>, vector<8x8xbf16>
      %28 = arith.index_cast %25 : i32 to index
      %c0_32 = arith.constant 0 : index
      %29 = vector.load %arg8[%28, %c0_32] : memref<16x128xbf16, #tpu.memory_space<vmem>>, vector<8x8xbf16>
      %30 = arith.index_cast %25 : i32 to index
      %c0_33 = arith.constant 0 : index
      %31 = vector.load %arg9[%30, %c0_33] : memref<16x128xbf16, #tpu.memory_space<vmem>>, vector<8x8xbf16>
      %cst_34 = arith.constant dense<0.000000e+00> : vector<8x8xf32>
      %32 = tpu.matmul %27, %29, %cst_34 {dimension_numbers = #tpu.dot_dimension_numbers<[1], [1], [0], [0], [0, 0, 1, 0], [], []>} : vector<8x8xbf16>, vector<8x8xbf16>, vector<8x8xf32> -> vector<8x8xf32>
      %cst_35 = arith.constant dense<0xFF800000> : vector<8xf32>
      %33 = vector.multi_reduction <maximumf>, %32, %cst_35 [1] : vector<8x8xf32> to vector<8xf32>
      %34 = vector.shape_cast %33 : vector<8xf32> to vector<8x1xf32>
      %35 = vector.broadcast %34 : vector<8x1xf32> to vector<8x8xf32>
      %36 = arith.subf %32, %35 : vector<8x8xf32>
      %37 = math.exp %36 : vector<8x8xf32>
      %cst_36 = arith.constant dense<0.000000e+00> : vector<8xf32>
      %38 = vector.multi_reduction <add>, %37, %cst_36 [1] : vector<8x8xf32> to vector<8xf32>
      %39 = vector.shape_cast %38 : vector<8xf32> to vector<8x1xf32>
      %40 = tpu.reciprocal %39 {approx = true} : vector<8x1xf32> -> vector<8x1xf32>
      %41 = vector.broadcast %40 : vector<8x1xf32> to vector<8x8xf32>
      %42 = arith.mulf %37, %41 : vector<8x8xf32>
      %43 = arith.truncf %42 : vector<8x8xf32> to vector<8x8xbf16>
      %cst_37 = arith.constant dense<0.000000e+00> : vector<8x8xf32>
      %44 = tpu.matmul %43, %31, %cst_37 {dimension_numbers = #tpu.dot_dimension_numbers<[1], [0], [0], [1], [0, 0, 1, 1], [], []>} : vector<8x8xbf16>, vector<8x8xbf16>, vector<8x8xf32> -> vector<8x8xf32>
      %45 = arith.truncf %44 : vector<8x8xf32> to vector<8x8xbf16>
      %c0_38 = arith.constant 0 : index
      %c0_39 = arith.constant 0 : index
      %46 = vector.load %arg10[%c0_38, %c0_39] : memref<8x128xbf16, #tpu.memory_space<vmem>>, vector<8x8xbf16>
      tpu.vector_store %arg10[%c0_38, %c0_39], %45 {strides = array<i32>} : memref<8x128xbf16, #tpu.memory_space<vmem>>, vector<8x8xbf16>,
      %47 = arith.index_cast %25 : i32 to index
      %c8_40 = arith.constant 8 : index
      %48 = vector.load %arg7[%47, %c8_40] : memref<16x128xbf16, #tpu.memory_space<vmem>>, vector<8x8xbf16>
      %49 = arith.index_cast %25 : i32 to index
      %c8_41 = arith.constant 8 : index
      %50 = vector.load %arg8[%49, %c8_41] : memref<16x128xbf16, #tpu.memory_space<vmem>>, vector<8x8xbf16>
      %51 = arith.index_cast %25 : i32 to index
      %c8_42 = arith.constant 8 : index
      %52 = vector.load %arg9[%51, %c8_42] : memref<16x128xbf16, #tpu.memory_space<vmem>>, vector<8x8xbf16>
      %cst_43 = arith.constant dense<0.000000e+00> : vector<8x8xf32>
      %53 = tpu.matmul %48, %50, %cst_43 {dimension_numbers = #tpu.dot_dimension_numbers<[1], [1], [0], [0], [0, 0, 1, 0], [], []>} : vector<8x8xbf16>, vector<8x8xbf16>, vector<8x8xf32> -> vector<8x8xf32>
      %cst_44 = arith.constant dense<0xFF800000> : vector<8xf32>
      %54 = vector.multi_reduction <maximumf>, %53, %cst_44 [1] : vector<8x8xf32> to vector<8xf32>
      %55 = vector.shape_cast %54 : vector<8xf32> to vector<8x1xf32>
      %56 = vector.broadcast %55 : vector<8x1xf32> to vector<8x8xf32>
      %57 = arith.subf %53, %56 : vector<8x8xf32>
      %58 = math.exp %57 : vector<8x8xf32>
      %cst_45 = arith.constant dense<0.000000e+00> : vector<8xf32>
      %59 = vector.multi_reduction <add>, %58, %cst_45 [1] : vector<8x8xf32> to vector<8xf32>
      %60 = vector.shape_cast %59 : vector<8xf32> to vector<8x1xf32>
      %61 = tpu.reciprocal %60 {approx = true} : vector<8x1xf32> -> vector<8x1xf32>
      %62 = vector.broadcast %61 : vector<8x1xf32> to vector<8x8xf32>
      %63 = arith.mulf %58, %62 : vector<8x8xf32>
      %64 = arith.truncf %63 : vector<8x8xf32> to vector<8x8xbf16>
      %cst_46 = arith.constant dense<0.000000e+00> : vector<8x8xf32>
      %65 = tpu.matmul %64, %52, %cst_46 {dimension_numbers = #tpu.dot_dimension_numbers<[1], [0], [0], [1], [0, 0, 1, 1], [], []>} : vector<8x8xbf16>, vector<8x8xbf16>, vector<8x8xf32> -> vector<8x8xf32>
      %66 = arith.truncf %65 : vector<8x8xf32> to vector<8x8xbf16>
      %c0_47 = arith.constant 0 : index
      %c8_48 = arith.constant 8 : index
      %67 = vector.load %arg10[%c0_47, %c8_48] : memref<8x128xbf16, #tpu.memory_space<vmem>>, vector<8x8xbf16>
      tpu.vector_store %arg10[%c0_47, %c8_48], %66 {strides = array<i32>} : memref<8x128xbf16, #tpu.memory_space<vmem>>, vector<8x8xbf16>,
      %68 = arith.index_cast %25 : i32 to index
      %c16 = arith.constant 16 : index
      %69 = vector.load %arg7[%68, %c16] : memref<16x128xbf16, #tpu.memory_space<vmem>>, vector<8x8xbf16>
      %70 = arith.index_cast %25 : i32 to index
      %c16_49 = arith.constant 16 : index
      %71 = vector.load %arg8[%70, %c16_49] : memref<16x128xbf16, #tpu.memory_space<vmem>>, vector<8x8xbf16>
      %72 = arith.index_cast %25 : i32 to index
      %c16_50 = arith.constant 16 : index
      %73 = vector.load %arg9[%72, %c16_50] : memref<16x128xbf16, #tpu.memory_space<vmem>>, vector<8x8xbf16>
      %cst_51 = arith.constant dense<0.000000e+00> : vector<8x8xf32>
      %74 = tpu.matmul %69, %71, %cst_51 {dimension_numbers = #tpu.dot_dimension_numbers<[1], [1], [0], [0], [0, 0, 1, 0], [], []>} : vector<8x8xbf16>, vector<8x8xbf16>, vector<8x8xf32> -> vector<8x8xf32>
      %cst_52 = arith.constant dense<0xFF800000> : vector<8xf32>
      %75 = vector.multi_reduction <maximumf>, %74, %cst_52 [1] : vector<8x8xf32> to vector<8xf32>
      %76 = vector.shape_cast %75 : vector<8xf32> to vector<8x1xf32>
      %77 = vector.broadcast %76 : vector<8x1xf32> to vector<8x8xf32>
      %78 = arith.subf %74, %77 : vector<8x8xf32>
      %79 = math.exp %78 : vector<8x8xf32>
      %cst_53 = arith.constant dense<0.000000e+00> : vector<8xf32>
      %80 = vector.multi_reduction <add>, %79, %cst_53 [1] : vector<8x8xf32> to vector<8xf32>
      %81 = vector.shape_cast %80 : vector<8xf32> to vector<8x1xf32>
      %82 = tpu.reciprocal %81 {approx = true} : vector<8x1xf32> -> vector<8x1xf32>
      %83 = vector.broadcast %82 : vector<8x1xf32> to vector<8x8xf32>
      %84 = arith.mulf %79, %83 : vector<8x8xf32>
      %85 = arith.truncf %84 : vector<8x8xf32> to vector<8x8xbf16>
      %cst_54 = arith.constant dense<0.000000e+00> : vector<8x8xf32>
      %86 = tpu.matmul %85, %73, %cst_54 {dimension_numbers = #tpu.dot_dimension_numbers<[1], [0], [0], [1], [0, 0, 1, 1], [], []>} : vector<8x8xbf16>, vector<8x8xbf16>, vector<8x8xf32> -> vector<8x8xf32>
      %87 = arith.truncf %86 : vector<8x8xf32> to vector<8x8xbf16>
      %c0_55 = arith.constant 0 : index
      %c16_56 = arith.constant 16 : index
      %88 = vector.load %arg10[%c0_55, %c16_56] : memref<8x128xbf16, #tpu.memory_space<vmem>>, vector<8x8xbf16>
      tpu.vector_store %arg10[%c0_55, %c16_56], %87 {strides = array<i32>} : memref<8x128xbf16, #tpu.memory_space<vmem>>, vector<8x8xbf16>,
      %89 = arith.index_cast %25 : i32 to index
      %c24 = arith.constant 24 : index
      %90 = vector.load %arg7[%89, %c24] : memref<16x128xbf16, #tpu.memory_space<vmem>>, vector<8x8xbf16>
      %91 = arith.index_cast %25 : i32 to index
      %c24_57 = arith.constant 24 : index
      %92 = vector.load %arg8[%91, %c24_57] : memref<16x128xbf16, #tpu.memory_space<vmem>>, vector<8x8xbf16>
      %93 = arith.index_cast %25 : i32 to index
      %c24_58 = arith.constant 24 : index
      %94 = vector.load %arg9[%93, %c24_58] : memref<16x128xbf16, #tpu.memory_space<vmem>>, vector<8x8xbf16>
      %cst_59 = arith.constant dense<0.000000e+00> : vector<8x8xf32>
      %95 = tpu.matmul %90, %92, %cst_59 {dimension_numbers = #tpu.dot_dimension_numbers<[1], [1], [0], [0], [0, 0, 1, 0], [], []>} : vector<8x8xbf16>, vector<8x8xbf16>, vector<8x8xf32> -> vector<8x8xf32>
      %cst_60 = arith.constant dense<0xFF800000> : vector<8xf32>
      %96 = vector.multi_reduction <maximumf>, %95, %cst_60 [1] : vector<8x8xf32> to vector<8xf32>
      %97 = vector.shape_cast %96 : vector<8xf32> to vector<8x1xf32>
      %98 = vector.broadcast %97 : vector<8x1xf32> to vector<8x8xf32>
      %99 = arith.subf %95, %98 : vector<8x8xf32>
      %100 = math.exp %99 : vector<8x8xf32>
      %cst_61 = arith.constant dense<0.000000e+00> : vector<8xf32>
      %101 = vector.multi_reduction <add>, %100, %cst_61 [1] : vector<8x8xf32> to vector<8xf32>
      %102 = vector.shape_cast %101 : vector<8xf32> to vector<8x1xf32>
      %103 = tpu.reciprocal %102 {approx = true} : vector<8x1xf32> -> vector<8x1xf32>
      %104 = vector.broadcast %103 : vector<8x1xf32> to vector<8x8xf32>
      %105 = arith.mulf %100, %104 : vector<8x8xf32>
      %106 = arith.truncf %105 : vector<8x8xf32> to vector<8x8xbf16>
      %cst_62 = arith.constant dense<0.000000e+00> : vector<8x8xf32>
      %107 = tpu.matmul %106, %94, %cst_62 {dimension_numbers = #tpu.dot_dimension_numbers<[1], [0], [0], [1], [0, 0, 1, 1], [], []>} : vector<8x8xbf16>, vector<8x8xbf16>, vector<8x8xf32> -> vector<8x8xf32>
      %108 = arith.truncf %107 : vector<8x8xf32> to vector<8x8xbf16>
      %c0_63 = arith.constant 0 : index
      %c24_64 = arith.constant 24 : index
      %109 = vector.load %arg10[%c0_63, %c24_64] : memref<8x128xbf16, #tpu.memory_space<vmem>>, vector<8x8xbf16>
      tpu.vector_store %arg10[%c0_63, %c24_64], %108 {strides = array<i32>} : memref<8x128xbf16, #tpu.memory_space<vmem>>, vector<8x8xbf16>,
      %c0_65 = arith.constant 0 : index
      %c0_66 = arith.constant 0 : index
      %110 = vector.load %arg10[%c0_65, %c0_66] : memref<8x128xbf16, #tpu.memory_space<vmem>>, vector<8x128xbf16>
      %111 = arith.index_cast %25 : i32 to index
      %c0_67 = arith.constant 0 : index
      %112 = vector.load %arg11[%111, %c0_67] : memref<16x128xbf16, #tpu.memory_space<vmem>>, vector<8x128xbf16>
      tpu.vector_store %arg11[%111, %c0_67], %110 {strides = array<i32>} : memref<16x128xbf16, #tpu.memory_space<vmem>>, vector<8x128xbf16>,
    }
    %c2_i32_18 = arith.constant 2 : i32
    %c0_19 = arith.constant 0 : index
    %c0_20 = arith.constant 0 : index
    %16 = vector.load %arg11[%c0_19, %c0_20] : memref<16x128xbf16, #tpu.memory_space<vmem>>, vector<8x128xbf16>
    %c0_21 = arith.constant 0 : index
    %c0_22 = arith.constant 0 : index
    %17 = vector.load %arg5[%c0_21, %c0_22] : memref<128x128xbf16, #tpu.memory_space<vmem>>, vector<128x128xbf16>
    %cst_23 = arith.constant dense<0.000000e+00> : vector<8x128xf32>
    %18 = tpu.matmul %16, %17, %cst_23 {dimension_numbers = #tpu.dot_dimension_numbers<[1], [0], [0], [1], [0, 0, 1, 1], [], []>} : vector<8x128xbf16>, vector<128x128xbf16>, vector<8x128xf32> -> vector<8x128xf32>
    %c0_24 = arith.constant 0 : index
    %c0_25 = arith.constant 0 : index
    %19 = vector.load %arg6[%c0_24, %c0_25] : memref<8x256xf32, #tpu.memory_space<vmem>>, vector<8x128xf32>
    tpu.vector_store %arg6[%c0_24, %c0_25], %18 {strides = array<i32>} : memref<8x256xf32, #tpu.memory_space<vmem>>, vector<8x128xf32>,
    %c8 = arith.constant 8 : index
    %c0_26 = arith.constant 0 : index
    %20 = vector.load %arg11[%c8, %c0_26] : memref<16x128xbf16, #tpu.memory_space<vmem>>, vector<8x128xbf16>
    %c0_27 = arith.constant 0 : index
    %c0_28 = arith.constant 0 : index
    %21 = vector.load %arg5[%c0_27, %c0_28] : memref<128x128xbf16, #tpu.memory_space<vmem>>, vector<128x128xbf16>
    %cst_29 = arith.constant dense<0.000000e+00> : vector<8x128xf32>
    %22 = tpu.matmul %20, %21, %cst_29 {dimension_numbers = #tpu.dot_dimension_numbers<[1], [0], [0], [1], [0, 0, 1, 1], [], []>} : vector<8x128xbf16>, vector<128x128xbf16>, vector<8x128xf32> -> vector<8x128xf32>
    %c0_30 = arith.constant 0 : index
    %c128 = arith.constant 128 : index
    %23 = vector.load %arg6[%c0_30, %c128] : memref<8x256xf32, #tpu.memory_space<vmem>>, vector<8x128xf32>
    tpu.vector_store %arg6[%c0_30, %c128], %22 {strides = array<i32>} : memref<8x256xf32, #tpu.memory_space<vmem>>, vector<8x128xf32>,
    return
  }
  func.func @transform_0(%arg0: i32) -> (i32, i32) {
    %c0_i32 = arith.constant 0 : i32
    %c0_i32_0 = arith.constant 0 : i32
    return %arg0, %c0_i32 : i32, i32
  }
  func.func @transform_1(%arg0: i32) -> (i32, i32) {
    %c0_i32 = arith.constant 0 : i32
    %c0_i32_0 = arith.constant 0 : i32
    %c0_i32_1 = arith.constant 0 : i32
    return %c0_i32, %c0_i32_0 : i32, i32
  }
  func.func @transform_2(%arg0: i32) -> (i32, i32) {
    %c0_i32 = arith.constant 0 : i32
    %c0_i32_0 = arith.constant 0 : i32
    %c0_i32_1 = arith.constant 0 : i32
    return %c0_i32, %c0_i32_0 : i32, i32
  }
  func.func @transform_3(%arg0: i32) -> (i32, i32) {
    %c0_i32 = arith.constant 0 : i32
    %c0_i32_0 = arith.constant 0 : i32
    %c0_i32_1 = arith.constant 0 : i32
    return %c0_i32, %c0_i32_0 : i32, i32
  }
  func.func @transform_4(%arg0: i32) -> (i32, i32) {
    %c0_i32 = arith.constant 0 : i32
    %c0_i32_0 = arith.constant 0 : i32
    %c0_i32_1 = arith.constant 0 : i32
    return %c0_i32, %c0_i32_0 : i32, i32
  }
  func.func @transform_5(%arg0: i32) -> (i32, i32) {
    %c0_i32 = arith.constant 0 : i32
    %c0_i32_0 = arith.constant 0 : i32
    return %c0_i32, %arg0 : i32, i32
  }
}

</mosaic_0001>

<bundles_post_ra>
// kernel: tpu_custom_call.1
= control target key start
LH: loop header
LB: loop body
LE: loop exit
PB: predicated region body
PF: predicated region fallthrough
CT: control target
= control target key end

     0   :  { %10 = vsyncpa [#allocation8], 0  ;;  %s2070_s0 = inlined_call_operand.hbm [shape: bf16[32,128], index: 0, kind: input, shape index: {}]   ;;  %s2071_s1 = inlined_call_operand.hbm [shape: bf16[128,128], index: 1, kind: input, shape index: {}]   ;;  %s2072_s2 = inlined_call_operand.hbm [shape: bf16[128,128], index: 2, kind: input, shape index: {}]   ;;  %s2073_s3 = inlined_call_operand.hbm [shape: bf16[128,128], index: 3, kind: input, shape index: {}]   ;;  %s2074_s4 = inlined_call_operand.hbm [shape: bf16[128,128], index: 4, kind: input, shape index: {}]   ;;  %s2075_s5 = inlined_call_operand.hbm [shape: f32[8,512], index: 5, kind: output, shape index: {}]  }
   0x1   :  { %12 = vsyncpa [#allocation8 + $0x1], 0 }
   0x2   :  { %13 = vsyncpa [#allocation11], 0 }
   0x3   :  { %14 = vsyncpa [#allocation14], 0 }
   0x4   :  { %15 = vsyncpa [#allocation9], 0 }
   0x5   :  { %17 = vsyncpa [#allocation9 + $0x1], 0  ;;  %s1821_s18 = smov 0   ;;  %s1823_s19 = smov 0  }
   0x6   :  { %s1825_s20 = smov 0   ;;  %s1827_s21 = smov 0  }
   0x7 LB: > { %s1842_s22 = sadd.s32 4294967295, %s1772_s21   ;;  %s1167_s23 = sadd.s32 4294967294, %s1772_s21   ;;  %s1772_s21 = sphi %s1827_s21, %s2088_s21   ;;  %s1768_s20 = sphi %s1825_s20, %s2087_s20   ;;  %s1764_s19 = sphi %s1823_s19, %s2086_s19   ;;  %s1760_s18 = sphi %s1821_s18, %s2085_s18  }
   0x8   : > { %p43_p0 = scmp.ne.s32.totalorder %s1764_s19, %s1760_s18  ;;  %p44_p1 = scmp.eq.s32.totalorder %s1842_s22, 0 }
   0x9   : > { %p151_p2 = scmp.eq.s32.totalorder %s1842_s22, 1  ;;  %p157_p3 = scmp.eq.s32.totalorder %s1167_s23, 1 }
   0xa   : > { %p1851_p4 = por %p44_p1, %p43_p0  ;;  %p1168_p5 = scmp.ge.s32.totalorder %s1772_s21, 1 }
   0xb   : > { %p1856_p6 = por %p157_p3, %p43_p0  ;;  %p164_p7 = scmp.lt.s32.totalorder %s1772_s21, 3 }
   0xc   : > { %s175_s28 = sshll.u32 %s2071_s1, 4  ;;  %s1778_s30 = smov [#allocation10]   ;;  %s176_s28 = int_to_ptr.hbm [resolvable:$true] %s175_s28 }
   0xd   : > { %p1864_p8 = pnand %p1168_p5, %p164_p7  ;;  %s177_s6 = sshll.u32 %s1778_s30, 4  ;;  %s178_s6 = int_to_ptr.vmem [resolvable:$true] %s177_s6 }
   0xe   : > { %s203_s10 = sshll.u32 %s2073_s3, 4  ;;  %s2076_s11 = smov 64   ;;  %s204_s10 = int_to_ptr.hbm [resolvable:$true] %s203_s10 }
   0xf   : > { %p1444_p9 = pneg %p1864_p8  ;;  %s1780_s12 = smov 4  }
  0x10   : > { %s1781_s13 = smov [#allocation13]   ;;  %s189_s17 = sshll.u32 %s2072_s2, 4  ;;  %s190_s17 = int_to_ptr.hbm [resolvable:$true] %s189_s17 }
  0x11   : > { %p1872_p10 = pnand %p1444_p9, %p44_p1  ;;  %s205_s14 = sshll.u32 %s1781_s13, 4  ;;  %s206_s14 = int_to_ptr.vmem [resolvable:$true] %s205_s14 }
  0x12   : > { %s217_s27 = sshll.u32 %s2074_s4, 4  ;;  %s1907_s9 = sadd.s32 1, %s1772_s21   ;;  %s218_s27 = int_to_ptr.hbm [resolvable:$true] %s217_s27 }
  0x13   : > { %1447 = dma.hbm_to_vmem [thread:$0]  (!%p1872_p10), %s176_s28, 1024, %s178_s6, [#allocation11], %s2076_s11, %s2076_s11, %s1780_s12  }
  0x14   : > { %1453 = dma.hbm_to_vmem [thread:$0]  (!%p1872_p10), %s204_s10, 1024, %s206_s14, [#allocation14], %s2076_s11, %s2076_s11, %s1780_s12  }
  0x15   : > { %s1782_s28 = smov [#allocation12]   ;;  %s1783_s6 = smov [#allocation15]  }
  0x16   : > { %s191_s30 = sshll.u32 %s1782_s28, 4  ;;  %s219_s8 = sshll.u32 %s1783_s6, 4  ;;  %s192_s30 = int_to_ptr.vmem [resolvable:$true] %s191_s30  ;;  %s220_s8 = int_to_ptr.vmem [resolvable:$true] %s219_s8 }
  0x17   : > { %1450 = dma.hbm_to_vmem [thread:$0]  (!%p1872_p10), %s190_s17, 1024, %s192_s30, [#allocation11], %s2076_s11, %s2076_s11, %s1780_s12  }
  0x18   : > { %1456 = dma.hbm_to_vmem [thread:$0]  (!%p1872_p10), %s218_s27, 1024, %s220_s8, [#allocation14], %s2076_s11, %s2076_s11, %s1780_s12  }
  0x19   : > { %s30_s10 = sadd.s32 1, %s1768_s20  ;;  %s27_s13 = ssub.s32 %s1772_s21, %s1907_s9 }
  0x1a   : > { %p37_p12 = scmp.ne.s32.totalorder %s1768_s20, %s1764_s19  ;;  %p28_p13 = scmp.eq.s32.totalorder %s27_s13, 0 }
  0x1b   : > { %p38_p0 = scmp.eq.s32.totalorder %s1772_s21, 0  ;;  %p1469_p5 = scmp.lt.s32.totalorder %s1772_s21, 2 }
  0x1c   : > { %p1917_p3 = por %p151_p2, %p37_p12  ;;  %s233_s7 = sand.u32 1, %s1768_s20  }
  0x1d   : > { %s1923_s15 = scalar_select %p28_p13, %s1768_s20, %s30_s10  }
  0x1e   : > { %p39_p7 = por %p38_p0, %p37_p12  ;;  %s1174_s16 = sshll.u32 %s233_s7, 3 }
  0x1f   : > { %s1366_s17 = sshll.u32 %s1772_s21, 3  ;;  %s237_s28 = scalar_lea.vmem [#allocation7], %s1174_s16 }
  0x20   : > { %s242_s27 = scalar_lea.hbm %s2070_s0, %s1366_s17  ;;  %s245_s30 = sshll.u32 %s237_s28, 4  ;;  %s246_s30 = int_to_ptr.vmem [resolvable:$true] %s245_s30 }
  0x21   : > { %s243_s6 = sshll.u32 %s242_s27, 4  ;;  %p1930_p2 = pnand %p1469_p5, %p39_p7  ;;  %s244_s6 = int_to_ptr.hbm [resolvable:$true] %s243_s6 }
  0x22   : > { %s234_s10 = scalar_lea.sflag [#allocation8], %s233_s7  ;;  %s1664_s13 = sshra.s32 %s244_s6, 4  ;;  %s1665_s13 = int_to_ptr.hbm [resolvable:$true] %s1664_s13 }
  0x23   : > { %s1666_s11 = scalar_lea.hbm %s1665_s13, 8  ;;  %p1668_p10 = pneg %p1930_p2 }
  0x24   : > { %p1667_p9 = scmp.ne.s32.totalorder %s1665_s13, %s1666_s11  ;;  %s1671_s23 = scalar_lea.hbm %s2070_s0, 16 }
  0x25   : > { %p1672_p0 = scmp.lt.s32.totalorder %s1665_s13, %s2070_s0  ;;  %p1673_p5 = scmp.lt.s32.totalorder %s1671_s23, %s1666_s11 }
  0x26   : > { %p1669_p12 = pnand %p1668_p10, %p1667_p9 }
  0x27   : > { %p1674_p7 = por %p1673_p5, %p1672_p0 }
  0x28   : > { %p1670_p13 = pneg %p1669_p12 }
  0x2a   : > { %p1675_p11 = pnand %p1674_p7, %p1670_p13 }
  0x2c   : > { %1678 = shalt.err (!%p1675_p11)
}
  0x2d   : > { %s2083_s7 = smov 64   ;;  %257 = sbr.rel (%p1864_p8) target bundleno = 1447 (0x5a7), region = 40 }
  0x2e   : > { %1460 = dma.hbm_to_vmem [thread:$0]  (!%p1930_p2), %s244_s6, 128, %s246_s30, %s234_s10, %s2083_s7, %s2083_s7, %s1780_s12  }
  0x2f   : > { %s1950_s28 = sand.u32 (!%p1864_p8), 1, %s1764_s19  }
  0x30   : > { %s1178_s13 = sshll.u32 (!%p1864_p8), %s1950_s28, 3  ;;  %s260_s11 = scalar_lea.sflag (!%p1864_p8), [#allocation8], %s1950_s28 }
  0x31   : > { %s1954_s17 = scalar_lea.vmem (!%p1864_p8), [#allocation7], %s1178_s13 }
  0x32   : > { %1743 = dma.done.wait (%p1851_p4), %s260_s11, 128  }
  0x33   : > { %1745 = vsyncadd (%p1851_p4), %s260_s11, 4294967168 }
  0x34   : > { %1747 = dma.done.wait (%p44_p1), [#allocation11], 2048  }
  0x35   : > { %1749 = vsyncadd (%p44_p1), [#allocation11], 4294965248 }
  0x36   : > { %1751 = dma.done.wait (%p44_p1), [#allocation14], 2048  }
  0x37   : > { %1753 = vsyncadd (%p44_p1), [#allocation14], 4294965248  ;;  %s1183_s29 = sshll.u32 %s1950_s28, 4  ;;  %v1784_v0 = vmov 0   ;;  %v1375_v1 = vld [vmem:[#allocation10 + $0x38] sm:$0xff]  ;;  %v1374_v4 = vld [vmem:[#allocation10 + $0x30] sm:$0xff] }
  0x38   : > { %568 = vst [vmem:[#allocation5] sm:$0xf] %v1784_v0  ;;  %v1383_v2 = vld [vmem:[#allocation12 + $0x38] sm:$0xff]  ;;  %386 = vmatpush.bf16.msra.mxu0 %v1375_v1  ;;  %v1382_v5 = vld [vmem:[#allocation12 + $0x30] sm:$0xff]  ;;  %v1373_v7 = vld [vmem:[#allocation10 + $0x28] sm:$0xff]  ;;  %s1972_s24 = scalar_lea.vmem [#allocation16], %s1183_s29 }
  0x39   : > { %v1391_v3 = vld [vmem:[#allocation13 + $0x38] sm:$0xff]  ;;  %468 = vmatpush.bf16.msra.mxu1 %v1383_v2  ;;  %v1390_v6 = vld [vmem:[#allocation13 + $0x30] sm:$0xff]  ;;  %v1381_v8 = vld [vmem:[#allocation12 + $0x28] sm:$0xff]  ;;  %s1974_s12 = smov 0  }
  0x3a   : > { %550 = vmatpush.bf16.msra.mxu2 %v1391_v3  ;;  %v1389_v9 = vld [vmem:[#allocation13 + $0x28] sm:$0xff]  ;;  %v1372_v10 = vld [vmem:[#allocation10 + $0x20] sm:$0xff]  ;;  %v1371_v13 = vld [vmem:[#allocation10 + $0x18] sm:$0xff] }
  0x3b   : > { %v1380_v11 = vld [vmem:[#allocation12 + $0x20] sm:$0xff]  ;;  %v1379_v14 = vld [vmem:[#allocation12 + $0x18] sm:$0xff]  ;;  %v1370_v16 = vld [vmem:[#allocation10 + $0x10] sm:$0xff] }
  0x3c   : > { %387 = vmatpush.bf16.msra.mxu0 %v1374_v4  ;;  %v1388_v12 = vld [vmem:[#allocation13 + $0x20] sm:$0xff]  ;;  %v1387_v15 = vld [vmem:[#allocation13 + $0x18] sm:$0xff]  ;;  %v1378_v17 = vld [vmem:[#allocation12 + $0x10] sm:$0xff] }
  0x3d   : > { %469 = vmatpush.bf16.msra.mxu1 %v1382_v5  ;;  %v1386_v18 = vld [vmem:[#allocation13 + $0x10] sm:$0xff]  ;;  %v1369_v19 = vld [vmem:[#allocation10 + $0x8] sm:$0xff]  ;;  %v1368_v22 = vld [vmem:[#allocation10] sm:$0xff] }
  0x3e   : > { %551 = vmatpush.bf16.msra.mxu2 %v1390_v6  ;;  %v1377_v20 = vld [vmem:[#allocation12 + $0x8] sm:$0xff]  ;;  %v1376_v23 = vld [vmem:[#allocation12] sm:$0xff]  ;;  %v1367_v25 = vld [vmem:[%s1954_s17] sm:$0xff] }
  0x3f   : > { %v1385_v21 = vld [vmem:[#allocation13 + $0x8] sm:$0xff]  ;;  %v1384_v24 = vld [vmem:[#allocation13] sm:$0xff] }
  0x40   : > { %388 = vmatpush.bf16.msra.mxu0 %v1373_v7 }
  0x41   : > { %470 = vmatpush.bf16.msra.mxu1 %v1381_v8 }
  0x42   : > { %552 = vmatpush.bf16.msra.mxu2 %v1389_v9 }
  0x44   : > { %389 = vmatpush.bf16.msra.mxu0 %v1372_v10 }
  0x45   : > { %471 = vmatpush.bf16.msra.mxu1 %v1380_v11 }
  0x46   : > { %553 = vmatpush.bf16.msra.mxu2 %v1388_v12 }
  0x48   : > { %390 = vmatpush.bf16.msra.mxu0 %v1371_v13 }
  0x49   : > { %472 = vmatpush.bf16.msra.mxu1 %v1379_v14 }
  0x4a   : > { %554 = vmatpush.bf16.msra.mxu2 %v1387_v15 }
  0x4c   : > { %391 = vmatpush.bf16.msra.mxu0 %v1370_v16 }
  0x4d   : > { %473 = vmatpush.bf16.msra.mxu1 %v1378_v17 }
  0x4e   : > { %555 = vmatpush.bf16.msra.mxu2 %v1386_v18 }
  0x50   : > { %392 = vmatpush.bf16.msra.mxu0 %v1369_v19 }
  0x51   : > { %474 = vmatpush.bf16.msra.mxu1 %v1377_v20 }
  0x52   : > { %556 = vmatpush.bf16.msra.mxu2 %v1385_v21 }
  0x54   : > { %393 = vmatpush.bf16.msra.mxu0 %v1368_v22 }
  0x55   : > { %475 = vmatpush.bf16.msra.mxu1 %v1376_v23 }
  0x56   : > { %557 = vmatpush.bf16.msra.mxu2 %v1384_v24 }
  0x57   : > { %394 = vmatmul.bf16.vlgmr.msra.gmra.mxu0 %v1367_v25 }
  0x58   : > { %476 = vmatmul.bf16.vlgmr.msra.gmra.mxu1 %v1367_v25 }
  0x59   : > { %558 = vmatmul.bf16.vlgmr.msra.gmra.mxu2 %v1367_v25 }
  0xd4   : > { %v395_v26 = vpop.f32.mrf.mxu0 }
  0xd5   : > { %v477_v27 = vpop.f32.mrf.mxu1 }
  0xdc   : > { %v559_v28 = vpop.f32.mrf.mxu2  ;;  %v397_v29 = vpop.f32.mrf.mxu0 }
  0xdd   : > { %v479_v30 = vpop.f32.mrf.mxu1  ;;  %v1412_v31 = vpack.c.bf16 %v397_v29, %v395_v26 }
  0xde   : > { %v1417_v32 = vpack.c.bf16 %v479_v30, %v477_v27 }
  0xdf   : > { %1413 = vst [vmem:[#allocation2] sm:$0xff] %v1412_v31  }
  0xe0   : > { %1418 = vst [vmem:[#allocation3] sm:$0xff] %v1417_v32  }
  0xe4   : > { %v561_v33 = vpop.f32.mrf.mxu2 }
  0xe5   : > { %v1422_v34 = vpack.c.bf16 %v561_v33, %v559_v28 }
  0xe7   : > { %1423 = vst [vmem:[#allocation4] sm:$0xff] %v1422_v34  }
  0xe8 LB: >> { %s1284_s30 = sshll.u32 %s1776_s12, 3  ;;  %vm587_vm0 = vcmask 64512   ;;  %s1785_s23 = smov 112   ;;  %vm622_vm1 = vcmask 1043456   ;;  %vm640_vm2 = vcmask 60416   ;;  %vm715_vm3 = vcmask 126016   ;;  %s1776_s12 = sphi %s1974_s12, %s574_s12  }
  0xe9   : >> { %s576_s6 = sshra.s32 %s1284_s30, 3  ;;  %s1786_s26 = smov 104   ;;  %vm790_vm4 = vcmask 191616   ;;  %vm865_vm5 = vcmask 257216  }
  0xea   : >> { %s1980_s8 = sshll.u32 %s576_s6, 2  ;;  %s1787_s27 = smov 120  }
  0xeb   : >> { %s582_s10 = scalar_lea.vmem [#allocation3], %s1980_s8  ;;  %s1985_s16 = scalar_lea.vmem [#allocation2], %s1980_s8 }
  0xec   : >> { %v583_v35 = vld [vmem:[%s582_s10] sm:$0xf]  ;;  %s2003_s7 = scalar_lea.vmem [#allocation4], %s1980_s8  ;;  %s1788_s13 = smov 8  }
  0xed   : >> { %v592_v36 = vsel %vm587_vm0, %v583_v35, 0  ;;  %v580_v37 = vld [vmem:[%s1985_s16] sm:$0xf]  ;;  %s1789_s11 = smov 16   ;;  %s1790_s17 = smov 24  }
  0xee   : >> { %601 = vmatpush.bf16.xpose.msra.mxu0 %v592_v36  ;;  %v718_v38 = vld [vmem:[%s582_s10] sm:$0xf]  ;;  %s869_s29 = scalar_lea.vmem [#allocation6], %s1980_s8  ;;  %s574_s12 = sadd.s32 1, %s1776_s12  }
  0xef   : >> { %v726_v39 = vunpack.c.l.b16 %v718_v38  ;;  %v793_v40 = vld [vmem:[%s582_s10] sm:$0xf]  ;;  %p571_p1 = scmp.ge.s32.totalorder %s574_s12, 2  }
  0xf0   : >> { %v801_v42 = vunpack.c.l.b16 %v793_v40  ;;  %v717_v44 = vld [vmem:[%s1985_s16] sm:$0xf]  ;;  %s1408_s12 = sshll.u32 (%p571_p1), %s1842_s22, 4 }
  0xf1   : >> { %v727_v41 = vpack.c.b16 %v726_v39, %v726_v39  ;;  %v721_v45 = vunpack.c.l.b16 %v717_v44  ;;  %v792_v47 = vld [vmem:[%s1985_s16] sm:$0xf]  ;;  %s1041_s8 = scalar_lea.hbm (%p571_p1), %s2075_s5, %s1408_s12 }
  0xf2   : >> { %v802_v43 = vpack.c.b16 %v801_v42, %v801_v42  ;;  %v796_v48 = vunpack.c.l.b16 %v792_v47  ;;  %v643_v53 = vld [vmem:[%s582_s10] sm:$0xf]  ;;  %s1043_s10 = sshll.u32 (%p571_p1), %s1972_s24, 4  ;;  %s1044_s10 = int_to_ptr.vmem [resolvable:$true] %s1043_s10 }
  0xf3   : >> { %728 = vrot.lane.b32.xlu2 %v727_v41, %s1785_s23  ;;  %v722_v46 = vpack.c.b16 %v721_v45, %v721_v45  ;;  %v651_v54 = vunpack.c.l.b16 %v643_v53  ;;  %v642_v2 = vld [vmem:[%s1985_s16] sm:$0xf]  ;;  %s1045_s16 = sshll.u32 (%p571_p1), %s1041_s8, 4  ;;  %s1046_s16 = int_to_ptr.hbm [resolvable:$true] %s1045_s16 }
  0xf4   : >> { %v797_v51 = vpack.c.b16 %v796_v48, %v796_v48  ;;  %v646_v3 = vunpack.c.l.b16 %v642_v2  ;;  %v586_v5 = vld [vmem:[%s2003_s7] sm:$0xf] }
  0xf5   : >> { %1288 = vmatmul.msk.bf16.vlgmr.msra.gmra.mxu0 %vm587_vm0, %v580_v37  ;;  %v652_v55 = vpack.c.b16 %v651_v54, %v651_v54  ;;  %v624_v6 = vsel %vm622_vm1, %v586_v5, 0  ;;  %v644_v37 = vld [vmem:[%s2003_s7] sm:$0xf] }
  0xf6   : >> { %v647_v4 = vpack.c.b16 %v646_v3, %v646_v3  ;;  %633 = vmatpush.bf16.msra.mxu1 %v624_v6  ;;  %v687_v39 = vunpack.c.l.b16 %v644_v37  ;;  %v719_v45 = vld [vmem:[%s2003_s7] sm:$0xf] }
  0xf7   : >> { %v794_v47 = vld [vmem:[%s2003_s7] sm:$0xf] }
  0xf8   : >> { %v688_v41 = vpack.c.b16 %v687_v39, %v687_v39 }
  0xfb   : >> { %803 = vrot.lane.b32.xlu2 %v802_v43, %s1786_s26 }
 0x103   : >> { %723 = vrot.lane.b32.xlu2 %v722_v46, %s1785_s23  ;;  %v762_v46 = vunpack.c.l.b16 %v719_v45 }
 0x105   : >> { %v763_v48 = vpack.c.b16 %v762_v46, %v762_v46 }
 0x10b   : >> { %798 = vrot.lane.b32.xlu2 %v797_v51, %s1786_s26 }
 0x14d   : >> { %v729_v56 = vpop.permute.xlu2 %728 }
 0x14e   : >> { %v734_v7 = vsel %vm587_vm0, %v729_v56, 0 }
 0x14f   : >> { %743 = vmatpush.bf16.xpose.msrb.mxu1 %v734_v7 }
 0x155   : >> { %v804_v57 = vpop.permute.xlu2 %803 }
 0x156   : >> { %v809_v62 = vsel %vm587_vm0, %v804_v57, 0 }
 0x157   : >> { %818 = vmatpush.bf16.xpose.msrb.mxu0 %v809_v62 }
 0x15d   : >> { %v724_v61 = vpop.permute.xlu2 %723 }
 0x165   : >> { %v799_v1 = vpop.permute.xlu2 %798 }
 0x166   : >> { %1294 = vmatmul.msk.bf16.vlgmr.msrb.gmra.mxu0 %vm587_vm0, %v799_v1 }
 0x172   : >> { %v603_v49 = vpop.f32.mrf.mxu0 }
 0x173   : >> { %v607_v50 = vsel %vm587_vm0, %v603_v49, -inf }
 0x174   : >> { %608 = vmax.xlane.f32.xlu0 %v607_v50 }
 0x17a   : >> { %v605_v52 = vpop.f32.mrf.mxu0 }
 0x188   : >> { %653 = vrot.lane.b32.xlu0 %v652_v55, %s1787_s27 }
 0x1e3   : >> { %v820_v14 = vpop.f32.mrf.mxu0 }
 0x1e4   : >> { %v824_v15 = vsel %vm587_vm0, %v820_v14, -inf }
 0x1e7   : >> { %v609_v58 = vpop.xlane.xlu0 %608 }
 0x1e8   : >> { %v610_v59 = vsub.f32 %v603_v49, %v609_v58  ;;  %v837_v49 = vunpack.c.l.b16 %v794_v47 }
 0x1ea   : >> { %v611_v60 = vmul.f32 1.442695, %v610_v59  ;;  %v838_v50 = vpack.c.b16 %v837_v49, %v837_v49 }
 0x1eb   : >> { %v822_v16 = vpop.f32.mrf.mxu0 }
 0x1ec   : >> { %1528 = vpow2.f32 %v611_v60 }
 0x1f2   : >> { %v1529_v63 = vpop.eup %1528 }
 0x1f3   : >> { %v613_v0 = vsel %vm587_vm0, %v1529_v63, 0.0 }
 0x1f4   : >> { %614 = vadd.xlane.f32.xlu1 %v613_v0 }
 0x1fa   : >> { %v654_v8 = vpop.permute.xlu0 %653 }
 0x1fb   : >> { %v659_v9 = vsel %vm587_vm0, %v654_v8, 0 }
 0x1fc   : >> { %668 = vmatpush.bf16.xpose.msra.mxu2 %v659_v9 }
 0x20d   : >> { %648 = vrot.lane.b32.xlu1 %v647_v4, %s1787_s27 }
 0x237   : >> { %825 = vmax.xlane.f32.xlu1 %v824_v15 }
 0x267   : >> { %v615_v10 = vpop.xlane.xlu1 %614 }
 0x268   : >> { %1530 = vrcp.f32 %v615_v10 }
 0x26e   : >> { %v1531_v11 = vpop.eup %1530 }
 0x26f   : >> { %v617_v12 = vmul.f32 %v1531_v11, %v1529_v63 }
 0x271   : >> { %v618_v13 = vpack.c.bf16 %v617_v12, %v617_v12 }
 0x273   : >> { %1289 = vmatmul.msk.bf16.vlgmr.msra.gmra.mxu1 %vm587_vm0, %v618_v13 }
 0x27f   : >> { %v649_v17 = vpop.permute.xlu1 %648 }
 0x280   : >> { %1290 = vmatmul.msk.bf16.vlgmr.msra.gmra.mxu2 %vm587_vm0, %v649_v17 }
 0x283   : >> { %1292 = vmatmul.msk.bf16.vlgmr.msrb.gmra.mxu1 %vm587_vm0, %v724_v61 }
 0x2aa   : >> { %v826_v29 = vpop.xlane.xlu1 %825 }
 0x2ab   : >> { %v827_v33 = vsub.f32 %v820_v14, %v826_v29  ;;  %v1402_v29 = vld [vmem:[#allocation15 + $0x10] sm:$0xff] (%p571_p1) }
 0x2ad   : >> { %v828_v35 = vmul.f32 1.442695, %v827_v33  ;;  %v1400_v33 = vld [vmem:[#allocation15] sm:$0xff] (%p571_p1) }
 0x2f0   : >> { %v635_v18 = vpop.f32.mrf.mxu1 }
 0x2f1   : >> { %v639_v19 = vpack.c.bf16 %v635_v18, %v635_v18  ;;  %v1399_v18 = vld [vmem:[#allocation15 + $0x38] sm:$0xff] (%p571_p1) }
 0x2f2   : > { %936 = vmatpush.bf16.msra.mxu0 (%p571_p1), %v1399_v18 }
 0x2f3   : >> { %641 = vst.msk [vmem:[#allocation5] sm:$0xf] %vm640_vm2, %v639_v19  ;;  %v1407_v19 = vld [vmem:[#allocation15 + $0x38] sm:$0xff] (%p571_p1) }
 0x2f4   : > { %1015 = vmatpush.bf16.msra.mxu1 (%p571_p1), %v1407_v19 }
 0x2f8   : >> { %v637_v20 = vpop.f32.mrf.mxu1 }
 0x2f9   : > { %v1398_v20 = vld [vmem:[#allocation15 + $0x30] sm:$0xff] (%p571_p1) }
 0x2fa   : > { %937 = vmatpush.bf16.msra.mxu0 (%p571_p1), %v1398_v20 }
 0x300   : >> { %v745_v21 = vpop.f32.mrf.mxu1 }
 0x301   : >> { %v749_v22 = vsel %vm587_vm0, %v745_v21, -inf }
 0x302   : >> { %750 = vmax.xlane.f32.xlu2 %v749_v22  ;;  %v1397_v22 = vld [vmem:[#allocation15 + $0x28] sm:$0xff] (%p571_p1) }
 0x303   : >> { %v670_v23 = vpop.f32.mrf.mxu2  ;;  %938 = vmatpush.bf16.msra.mxu0 (%p571_p1), %v1397_v22 }
 0x304   : >> { %v674_v24 = vsel %vm587_vm0, %v670_v23, -inf }
 0x305   : >> { %675 = vmax.xlane.f32.xlu0 %v674_v24  ;;  %v1396_v24 = vld [vmem:[#allocation15 + $0x20] sm:$0xff] (%p571_p1) }
 0x307   : > { %939 = vmatpush.bf16.msra.mxu0 (%p571_p1), %v1396_v24 }
 0x308   : >> { %v747_v25 = vpop.f32.mrf.mxu1 }
 0x309   : > { %v1404_v25 = vld [vmem:[#allocation15 + $0x20] sm:$0xff] (%p571_p1) }
 0x30b   : >> { %v672_v26 = vpop.f32.mrf.mxu2 }
 0x30c   : > { %v1395_v26 = vld [vmem:[#allocation15 + $0x18] sm:$0xff] (%p571_p1) }
 0x30d   : > { %940 = vmatpush.bf16.msra.mxu0 (%p571_p1), %v1395_v26 }
 0x31a   : >> { %689 = vrot.lane.b32.xlu2 %v688_v41, %s1787_s27 }
 0x375   : >> { %v751_v27 = vpop.xlane.xlu2 %750 }
 0x376   : >> { %v752_v28 = vsub.f32 %v745_v21, %v751_v27  ;;  %v1406_v21 = vld [vmem:[#allocation15 + $0x30] sm:$0xff] (%p571_p1)  ;;  %v1403_v27 = vld [vmem:[#allocation15 + $0x18] sm:$0xff] (%p571_p1) }
 0x377   : > { %1016 = vmatpush.bf16.msra.mxu1 (%p571_p1), %v1406_v21 }
 0x378   : >> { %v753_v30 = vmul.f32 1.442695, %v752_v28  ;;  %v676_v31 = vpop.xlane.xlu0 %675  ;;  %v1394_v28 = vld [vmem:[#allocation15 + $0x10] sm:$0xff] (%p571_p1) }
 0x379   : >> { %v677_v32 = vsub.f32 %v670_v23, %v676_v31  ;;  %v1405_v23 = vld [vmem:[#allocation15 + $0x28] sm:$0xff] (%p571_p1)  ;;  %941 = vmatpush.bf16.msra.mxu0 (%p571_p1), %v1394_v28 }
 0x37a   : >> { %1532 = vpow2.f32 %v753_v30  ;;  %v1393_v30 = vld [vmem:[#allocation15 + $0x8] sm:$0xff] (%p571_p1) }
 0x37b   : >> { %v678_v34 = vmul.f32 1.442695, %v677_v32  ;;  %1017 = vmatpush.bf16.msra.mxu1 (%p571_p1), %v1405_v23  ;;  %v1401_v31 = vld [vmem:[#allocation15 + $0x8] sm:$0xff] (%p571_p1)  ;;  %v1392_v32 = vld [vmem:[#allocation15] sm:$0xff] (%p571_p1) }
 0x37d   : >> { %1534 = vpow2.f32 %v678_v34  ;;  %v690_v51 = vpop.permute.xlu2 %689  ;;  %942 = vmatpush.bf16.msra.mxu0 (%p571_p1), %v1393_v30 }
 0x37e   : >> { %1536 = vpow2.f32 %v828_v35  ;;  %v695_v52 = vsel %vm622_vm1, %v690_v51, 0 }
 0x37f   : >> { %704 = vmatpush.bf16.msra.mxu3 %v695_v52  ;;  %1018 = vmatpush.bf16.msra.mxu1 (%p571_p1), %v1404_v25 }
 0x380   : >> { %v1533_v36 = vpop.eup %1532 }
 0x381   : >> { %v755_v38 = vsel %vm587_vm0, %v1533_v36, 0.0  ;;  %943 = vmatpush.bf16.msra.mxu0 (%p571_p1), %v1392_v32 }
 0x382   : >> { %756 = vadd.xlane.f32.xlu1 %v755_v38 }
 0x383   : >> { %v1535_v40 = vpop.eup %1534  ;;  %1019 = vmatpush.bf16.msra.mxu1 (%p571_p1), %v1403_v27 }
 0x384   : >> { %v680_v42 = vsel %vm587_vm0, %v1535_v40, 0.0  ;;  %v1537_v43 = vpop.eup %1536 }
 0x385   : >> { %681 = vadd.xlane.f32.xlu0 %v680_v42  ;;  %v830_v44 = vsel %vm587_vm0, %v1537_v43, 0.0 }
 0x387   : > { %1020 = vmatpush.bf16.msra.mxu1 (%p571_p1), %v1402_v29 }
 0x38b   : > { %1021 = vmatpush.bf16.msra.mxu1 (%p571_p1), %v1401_v31 }
 0x38d   : >> { %831 = vadd.xlane.f32.xlu0 %v830_v44 }
 0x38f   : > { %1022 = vmatpush.bf16.msra.mxu1 (%p571_p1), %v1400_v33 }
 0x39b   : >> { %764 = vrot.lane.b32.xlu1 %v763_v48, %s1785_s23  ;;  %s1030_s23 = scalar_lea.sflag (%p571_p1), [#allocation9], %s1950_s28 }
 0x3a1   : >> { %839 = vrot.lane.b32.xlu0 %v838_v50, %s1786_s26  ;;  %s1708_s26 = sshra.s32 (%p571_p1), %s1046_s16, 4  ;;  %s1709_s26 = int_to_ptr.hbm [resolvable:$true] %s1708_s26 }
 0x3a2   : > { %s1710_s27 = scalar_lea.hbm (%p571_p1), %s1709_s26, 16  ;;  %p1715_p2 = scmp.lt.s32.totalorder (%p571_p1), %s1709_s26, %s2075_s5 }
 0x3a3   : > { %p1711_p4 = scmp.ne.s32.totalorder (%p571_p1), %s1709_s26, %s1710_s27 }
 0x3a5   : > { %p1712_p8 = pnand (%p571_p1), %p1711_p4, %p1917_p3 }
 0x3a7   : > { %p1713_p11 = pneg (%p571_p1), %p1712_p8 }
 0x3f5   : >> { %v757_v56 = vpop.xlane.xlu1 %756 }
 0x3f8   : >> { %v682_v53 = vpop.xlane.xlu0 %681 }
 0x3f9   : >> { %1538 = vrcp.f32 %v682_v53 }
 0x3fa   : >> { %1540 = vrcp.f32 %v757_v56 }
 0x3ff   : >> { %v1539_v54 = vpop.eup %1538 }
 0x400   : >> { %v684_v55 = vmul.f32 %v1539_v54, %v1535_v40  ;;  %v832_v58 = vpop.xlane.xlu0 %831  ;;  %v1541_v59 = vpop.eup %1540 }
 0x401   : >> { %1542 = vrcp.f32 %v832_v58  ;;  %v759_v61 = vmul.f32 %v1541_v59, %v1533_v36 }
 0x402   : >> { %v685_v57 = vpack.c.bf16 %v684_v55, %v684_v55 }
 0x403   : >> { %v760_v1 = vpack.c.bf16 %v759_v61, %v759_v61 }
 0x404   : >> { %1291 = vmatmul.msk.bf16.vlgmr.msra.gmra.mxu3 %vm587_vm0, %v685_v57 }
 0x407   : >> { %v1543_v63 = vpop.eup %1542 }
 0x408   : >> { %v834_v0 = vmul.f32 %v1543_v63, %v1537_v43 }
 0x40a   : >> { %v835_v4 = vpack.c.bf16 %v834_v0, %v834_v0 }
 0x40d   : >> { %v765_v60 = vpop.permute.xlu1 %764 }
 0x40e   : >> { %v770_v62 = vsel %vm622_vm1, %v765_v60, 0 }
 0x40f   : >> { %779 = vmatpush.bf16.msrb.mxu3 %v770_v62 }
 0x413   : >> { %v840_v2 = vpop.permute.xlu0 %839 }
 0x414   : >> { %1293 = vmatmul.msk.bf16.vlgmr.msrb.gmra.mxu3 %vm587_vm0, %v760_v1  ;;  %v845_v3 = vsel %vm622_vm1, %v840_v2, 0 }
 0x415   : >> { %854 = vmatpush.bf16.msrb.mxu2 %v845_v3 }
 0x418   : >> { %1295 = vmatmul.msk.bf16.vlgmr.msrb.gmra.mxu2 %vm587_vm0, %v835_v4 }
 0x487   : >> { %v706_v5 = vpop.f32.mrf.mxu3 }
 0x488   : >> { %v710_v6 = vpack.c.bf16 %v706_v5, %v706_v5 }
 0x48a   : >> { %712 = vrot.lane.b32.xlu2 %v710_v6, %s1788_s13  ;;  %s1714_s13 = scalar_lea.hbm (%p571_p1), %s2075_s5, 32 }
 0x48b   : > { %p1716_p9 = scmp.lt.s32.totalorder (%p571_p1), %s1714_s13, %s1710_s27 }
 0x48d   : > { %p1717_p10 = por (%p571_p1), %p1716_p9, %p1715_p2 }
 0x48f   : >> { %v708_v7 = vpop.f32.mrf.mxu3  ;;  %p1718_p12 = pnand (%p571_p1), %p1717_p10, %p1713_p11 }
 0x497   : >> { %v781_v8 = vpop.f32.mrf.mxu3 }
 0x498   : >> { %v785_v9 = vpack.c.bf16 %v781_v8, %v781_v8 }
 0x49a   : >> { %787 = vrot.lane.b32.xlu2 %v785_v9, %s1789_s11 }
 0x49b   : >> { %v856_v10 = vpop.f32.mrf.mxu2 }
 0x49c   : >> { %v860_v11 = vpack.c.bf16 %v856_v10, %v856_v10 }
 0x49e   : >> { %862 = vrot.lane.b32.xlu0 %v860_v11, %s1790_s17 }
 0x49f   : >> { %v783_v12 = vpop.f32.mrf.mxu3 }
 0x4a3   : >> { %v858_v13 = vpop.f32.mrf.mxu2 }
 0x4e4   : >> { %v713_v14 = vpop.permute.xlu2 %712 }
 0x4e5   : >> { %716 = vst.msk [vmem:[#allocation5] sm:$0xf] %vm715_vm3, %v713_v14 }
 0x4f4   : >> { %v788_v15 = vpop.permute.xlu2 %787 }
 0x4f5   : >> { %791 = vst.msk [vmem:[#allocation5] sm:$0xf] %vm790_vm4, %v788_v15 }
 0x510   : >> { %v863_v16 = vpop.permute.xlu0 %862 }
 0x511   : >> { %866 = vst.msk [vmem:[#allocation5] sm:$0xf] %vm865_vm5, %v863_v16 }
 0x515   : > { %573 = sbr.rel (!%p571_p1) target bundleno = 232 (0xe8), region = 112 }
 0x518   : >> { %v867_v17 = vld [vmem:[#allocation5] sm:$0xf] }
 0x519   : >> { %870 = vst [vmem:[%s869_s29] sm:$0xf] %v867_v17 }
 0x520   : > { %v871_v34 = vld [vmem:[#allocation6] sm:$0xf]  ;;  %v950_v35 = vld [vmem:[#allocation6 + $0x4] sm:$0xf] }
 0x521   : > { %944 = vmatmul.bf16.vlgmr.msra.gmra.mxu0 %v871_v34  ;;  %1023 = vmatmul.bf16.vlgmr.msra.gmra.mxu1 %v950_v35 }
 0x59e   : > { %v945_v36 = vpop.f32.mrf.mxu0  ;;  %v1024_v37 = vpop.f32.mrf.mxu1 }
 0x59f   : > { %949 = vst [vmem:[%s1972_s24] sm:$0xff] %v945_v36 }
 0x5a0   : > { %1028 = vst [vmem:[%s1972_s24 + $0x8] sm:$0xff] %v1024_v37 }
 0x5a1   : > { %1721 = shalt.err (!%p1718_p12)
}
 0x5a2   : > { %1442 = dma.vmem_to_hbm [thread:$0]  (%p1917_p3), %s1044_s10, 256, %s1046_s16, %s1030_s23  }
 0x5a6   : > { %v947_v38 = vpop.f32.mrf.mxu0  ;;  %v1026_v39 = vpop.f32.mrf.mxu1 }
 0x5a7 PF: > { %s1057_s28 = sand.u32 1, %s1760_s18   ;;  %p2084_p13 = scmp.ge.s32.totalorder %s1772_s21, 2 }
 0x5a8   : > { %s1058_s24 = scalar_lea.sflag [#allocation9], %s1057_s28 }
 0x5a9   : > { %p1462_p0 = pnand %p2084_p13, %p1856_p6 }
 0x5ab   : > { %p1463_p5 = pneg %p1462_p0 }
 0x5ad   : > { %1755 = dma.done.wait (%p1463_p5), %s1058_s24, 256  }
 0x5ae   : > { %1757 = vsyncadd (%p1463_p5), %s1058_s24, 4294967040  ;;  %p20_p3 = scmp.ge.s32.totalorder %s1907_s9, 4   ;;  %s2085_s18 = smov %s1764_s19 }
 0x5af   : > { %s2086_s19 = smov %s1768_s20  ;;  %s2087_s20 = smov %s1923_s15 }
 0x5b0   : > { %s2088_s21 = smov %s1907_s9  ;;  %22 = sbr.rel (!%p20_p3) target bundleno = 7 (0x7), region = 123 }
 0x5b5   :  { %1064 = vsyncpa [#allocation8], 1 }
 0x5b6   :  { %1066 = vsyncpa [#allocation8 + $0x1], 1 }
 0x5b7   :  { %1067 = vsyncpa [#allocation11], 1 }
 0x5b8   :  { %1068 = vsyncpa [#allocation14], 1 }
 0x5b9   :  { %1069 = vsyncpa [#allocation9], 1 }
 0x5ba   :  { %1071 = vsyncpa [#allocation9 + $0x1], 1 }

// kernel: tpu_custom_call.1
= control target key start
LH: loop header
LB: loop body
LE: loop exit
PB: predicated region body
PF: predicated region fallthrough
CT: control target
= control target key end

     0   :  { %10 = vsyncpa [#allocation8], 0  ;;  %s2070_s0 = inlined_call_operand.hbm [shape: bf16[32,128], index: 0, kind: input, shape index: {}]   ;;  %s2071_s1 = inlined_call_operand.hbm [shape: bf16[128,128], index: 1, kind: input, shape index: {}]   ;;  %s2072_s2 = inlined_call_operand.hbm [shape: bf16[128,128], index: 2, kind: input, shape index: {}]   ;;  %s2073_s3 = inlined_call_operand.hbm [shape: bf16[128,128], index: 3, kind: input, shape index: {}]   ;;  %s2074_s4 = inlined_call_operand.hbm [shape: bf16[128,128], index: 4, kind: input, shape index: {}]   ;;  %s2075_s5 = inlined_call_operand.hbm [shape: f32[8,512], index: 5, kind: output, shape index: {}]  }
   0x1   :  { %12 = vsyncpa [#allocation8 + $0x1], 0 }
   0x2   :  { %13 = vsyncpa [#allocation11], 0 }
   0x3   :  { %14 = vsyncpa [#allocation14], 0 }
   0x4   :  { %15 = vsyncpa [#allocation9], 0 }
   0x5   :  { %17 = vsyncpa [#allocation9 + $0x1], 0  ;;  %s1821_s18 = smov 0   ;;  %s1823_s19 = smov 0  }
   0x6   :  { %s1825_s20 = smov 0   ;;  %s1827_s21 = smov 0  }
   0x7 LB: > { %s1842_s22 = sadd.s32 4294967295, %s1772_s21   ;;  %s1167_s23 = sadd.s32 4294967294, %s1772_s21   ;;  %s1772_s21 = sphi %s1827_s21, %s2088_s21   ;;  %s1768_s20 = sphi %s1825_s20, %s2087_s20   ;;  %s1764_s19 = sphi %s1823_s19, %s2086_s19   ;;  %s1760_s18 = sphi %s1821_s18, %s2085_s18  }
   0x8   : > { %p43_p0 = scmp.ne.s32.totalorder %s1764_s19, %s1760_s18  ;;  %p44_p1 = scmp.eq.s32.totalorder %s1842_s22, 0 }
   0x9   : > { %p151_p2 = scmp.eq.s32.totalorder %s1842_s22, 1  ;;  %p157_p3 = scmp.eq.s32.totalorder %s1167_s23, 1 }
   0xa   : > { %p1851_p4 = por %p44_p1, %p43_p0  ;;  %p1168_p5 = scmp.ge.s32.totalorder %s1772_s21, 1 }
   0xb   : > { %p1856_p6 = por %p157_p3, %p43_p0  ;;  %p164_p7 = scmp.lt.s32.totalorder %s1772_s21, 3 }
   0xc   : > { %s175_s28 = sshll.u32 %s2071_s1, 4  ;;  %s1778_s30 = smov [#allocation10]   ;;  %s176_s28 = int_to_ptr.hbm [resolvable:$true] %s175_s28 }
   0xd   : > { %p1864_p8 = pnand %p1168_p5, %p164_p7  ;;  %s177_s6 = sshll.u32 %s1778_s30, 4  ;;  %s178_s6 = int_to_ptr.vmem [resolvable:$true] %s177_s6 }
   0xe   : > { %s203_s10 = sshll.u32 %s2073_s3, 4  ;;  %s2076_s11 = smov 64   ;;  %s204_s10 = int_to_ptr.hbm [resolvable:$true] %s203_s10 }
   0xf   : > { %p1444_p9 = pneg %p1864_p8  ;;  %s1780_s12 = smov 4  }
  0x10   : > { %s1781_s13 = smov [#allocation13]   ;;  %s189_s17 = sshll.u32 %s2072_s2, 4  ;;  %s190_s17 = int_to_ptr.hbm [resolvable:$true] %s189_s17 }
  0x11   : > { %p1872_p10 = pnand %p1444_p9, %p44_p1  ;;  %s205_s14 = sshll.u32 %s1781_s13, 4  ;;  %s206_s14 = int_to_ptr.vmem [resolvable:$true] %s205_s14 }
  0x12   : > { %s217_s27 = sshll.u32 %s2074_s4, 4  ;;  %s1907_s9 = sadd.s32 1, %s1772_s21   ;;  %s218_s27 = int_to_ptr.hbm [resolvable:$true] %s217_s27 }
  0x13   : > { %1447 = dma.hbm_to_vmem [thread:$0]  (!%p1872_p10), %s176_s28, 1024, %s178_s6, [#allocation11], %s2076_s11, %s2076_s11, %s1780_s12  }
  0x14   : > { %1453 = dma.hbm_to_vmem [thread:$0]  (!%p1872_p10), %s204_s10, 1024, %s206_s14, [#allocation14], %s2076_s11, %s2076_s11, %s1780_s12  }
  0x15   : > { %s1782_s28 = smov [#allocation12]   ;;  %s1783_s6 = smov [#allocation15]  }
  0x16   : > { %s191_s30 = sshll.u32 %s1782_s28, 4  ;;  %s219_s8 = sshll.u32 %s1783_s6, 4  ;;  %s192_s30 = int_to_ptr.vmem [resolvable:$true] %s191_s30  ;;  %s220_s8 = int_to_ptr.vmem [resolvable:$true] %s219_s8 }
  0x17   : > { %1450 = dma.hbm_to_vmem [thread:$0]  (!%p1872_p10), %s190_s17, 1024, %s192_s30, [#allocation11], %s2076_s11, %s2076_s11, %s1780_s12  }
  0x18   : > { %1456 = dma.hbm_to_vmem [thread:$0]  (!%p1872_p10), %s218_s27, 1024, %s220_s8, [#allocation14], %s2076_s11, %s2076_s11, %s1780_s12  }
  0x19   : > { %s30_s10 = sadd.s32 1, %s1768_s20  ;;  %s27_s13 = ssub.s32 %s1772_s21, %s1907_s9 }
  0x1a   : > { %p37_p12 = scmp.ne.s32.totalorder %s1768_s20, %s1764_s19  ;;  %p28_p13 = scmp.eq.s32.totalorder %s27_s13, 0 }
  0x1b   : > { %p38_p0 = scmp.eq.s32.totalorder %s1772_s21, 0  ;;  %p1469_p5 = scmp.lt.s32.totalorder %s1772_s21, 2 }
  0x1c   : > { %p1917_p3 = por %p151_p2, %p37_p12  ;;  %s233_s7 = sand.u32 1, %s1768_s20  }
  0x1d   : > { %s1923_s15 = scalar_select %p28_p13, %s1768_s20, %s30_s10  }
  0x1e   : > { %p39_p7 = por %p38_p0, %p37_p12  ;;  %s1174_s16 = sshll.u32 %s233_s7, 3 }
  0x1f   : > { %s1366_s17 = sshll.u32 %s1772_s21, 3  ;;  %s237_s28 = scalar_lea.vmem [#allocation7], %s1174_s16 }
  0x20   : > { %s242_s27 = scalar_lea.hbm %s2070_s0, %s1366_s17  ;;  %s245_s30 = sshll.u32 %s237_s28, 4  ;;  %s246_s30 = int_to_ptr.vmem [resolvable:$true] %s245_s30 }
  0x21   : > { %s243_s6 = sshll.u32 %s242_s27, 4  ;;  %p1930_p2 = pnand %p1469_p5, %p39_p7  ;;  %s244_s6 = int_to_ptr.hbm [resolvable:$true] %s243_s6 }
  0x22   : > { %s234_s10 = scalar_lea.sflag [#allocation8], %s233_s7  ;;  %s1664_s13 = sshra.s32 %s244_s6, 4  ;;  %s1665_s13 = int_to_ptr.hbm [resolvable:$true] %s1664_s13 }
  0x23   : > { %s1666_s11 = scalar_lea.hbm %s1665_s13, 8  ;;  %p1668_p10 = pneg %p1930_p2 }
  0x24   : > { %p1667_p9 = scmp.ne.s32.totalorder %s1665_s13, %s1666_s11  ;;  %s1671_s23 = scalar_lea.hbm %s2070_s0, 16 }
  0x25   : > { %p1672_p0 = scmp.lt.s32.totalorder %s1665_s13, %s2070_s0  ;;  %p1673_p5 = scmp.lt.s32.totalorder %s1671_s23, %s1666_s11 }
  0x26   : > { %p1669_p12 = pnand %p1668_p10, %p1667_p9 }
  0x27   : > { %p1674_p7 = por %p1673_p5, %p1672_p0 }
  0x28   : > { %p1670_p13 = pneg %p1669_p12 }
  0x2a   : > { %p1675_p11 = pnand %p1674_p7, %p1670_p13 }
  0x2c   : > { %1678 = shalt.err (!%p1675_p11)
}
  0x2d   : > { %s2083_s7 = smov 64   ;;  %257 = sbr.rel (%p1864_p8) target bundleno = 1447 (0x5a7), region = 40 }
  0x2e   : > { %1460 = dma.hbm_to_vmem [thread:$0]  (!%p1930_p2), %s244_s6, 128, %s246_s30, %s234_s10, %s2083_s7, %s2083_s7, %s1780_s12  }
  0x2f   : > { %s1950_s28 = sand.u32 (!%p1864_p8), 1, %s1764_s19  }
  0x30   : > { %s1178_s13 = sshll.u32 (!%p1864_p8), %s1950_s28, 3  ;;  %s260_s11 = scalar_lea.sflag (!%p1864_p8), [#allocation8], %s1950_s28 }
  0x31   : > { %s1954_s17 = scalar_lea.vmem (!%p1864_p8), [#allocation7], %s1178_s13 }
  0x32   : > { %1743 = dma.done.wait (%p1851_p4), %s260_s11, 128  }
  0x33   : > { %1745 = vsyncadd (%p1851_p4), %s260_s11, 4294967168 }
  0x34   : > { %1747 = dma.done.wait (%p44_p1), [#allocation11], 2048  }
  0x35   : > { %1749 = vsyncadd (%p44_p1), [#allocation11], 4294965248 }
  0x36   : > { %1751 = dma.done.wait (%p44_p1), [#allocation14], 2048  }
  0x37   : > { %1753 = vsyncadd (%p44_p1), [#allocation14], 4294965248  ;;  %s1183_s29 = sshll.u32 %s1950_s28, 4  ;;  %v1784_v0 = vmov 0   ;;  %v1375_v1 = vld [vmem:[#allocation10 + $0x38] sm:$0xff]  ;;  %v1374_v4 = vld [vmem:[#allocation10 + $0x30] sm:$0xff] }
  0x38   : > { %568 = vst [vmem:[#allocation5] sm:$0xf] %v1784_v0  ;;  %v1383_v2 = vld [vmem:[#allocation12 + $0x38] sm:$0xff]  ;;  %386 = vmatpush.bf16.msra.mxu0 %v1375_v1  ;;  %v1382_v5 = vld [vmem:[#allocation12 + $0x30] sm:$0xff]  ;;  %v1373_v7 = vld [vmem:[#allocation10 + $0x28] sm:$0xff]  ;;  %s1972_s24 = scalar_lea.vmem [#allocation16], %s1183_s29 }
  0x39   : > { %v1391_v3 = vld [vmem:[#allocation13 + $0x38] sm:$0xff]  ;;  %468 = vmatpush.bf16.msra.mxu1 %v1383_v2  ;;  %v1390_v6 = vld [vmem:[#allocation13 + $0x30] sm:$0xff]  ;;  %v1381_v8 = vld [vmem:[#allocation12 + $0x28] sm:$0xff]  ;;  %s1974_s12 = smov 0  }
  0x3a   : > { %550 = vmatpush.bf16.msra.mxu2 %v1391_v3  ;;  %v1389_v9 = vld [vmem:[#allocation13 + $0x28] sm:$0xff]  ;;  %v1372_v10 = vld [vmem:[#allocation10 + $0x20] sm:$0xff]  ;;  %v1371_v13 = vld [vmem:[#allocation10 + $0x18] sm:$0xff] }
  0x3b   : > { %v1380_v11 = vld [vmem:[#allocation12 + $0x20] sm:$0xff]  ;;  %v1379_v14 = vld [vmem:[#allocation12 + $0x18] sm:$0xff]  ;;  %v1370_v16 = vld [vmem:[#allocation10 + $0x10] sm:$0xff] }
  0x3c   : > { %387 = vmatpush.bf16.msra.mxu0 %v1374_v4  ;;  %v1388_v12 = vld [vmem:[#allocation13 + $0x20] sm:$0xff]  ;;  %v1387_v15 = vld [vmem:[#allocation13 + $0x18] sm:$0xff]  ;;  %v1378_v17 = vld [vmem:[#allocation12 + $0x10] sm:$0xff] }
  0x3d   : > { %469 = vmatpush.bf16.msra.mxu1 %v1382_v5  ;;  %v1386_v18 = vld [vmem:[#allocation13 + $0x10] sm:$0xff]  ;;  %v1369_v19 = vld [vmem:[#allocation10 + $0x8] sm:$0xff]  ;;  %v1368_v22 = vld [vmem:[#allocation10] sm:$0xff] }
  0x3e   : > { %551 = vmatpush.bf16.msra.mxu2 %v1390_v6  ;;  %v1377_v20 = vld [vmem:[#allocation12 + $0x8] sm:$0xff]  ;;  %v1376_v23 = vld [vmem:[#allocation12] sm:$0xff]  ;;  %v1367_v25 = vld [vmem:[%s1954_s17] sm:$0xff] }
  0x3f   : > { %v1385_v21 = vld [vmem:[#allocation13 + $0x8] sm:$0xff]  ;;  %v1384_v24 = vld [vmem:[#allocation13] sm:$0xff] }
  0x40   : > { %388 = vmatpush.bf16.msra.mxu0 %v1373_v7 }
  0x41   : > { %470 = vmatpush.bf16.msra.mxu1 %v1381_v8 }
  0x42   : > { %552 = vmatpush.bf16.msra.mxu2 %v1389_v9 }
  0x44   : > { %389 = vmatpush.bf16.msra.mxu0 %v1372_v10 }
  0x45   : > { %471 = vmatpush.bf16.msra.mxu1 %v1380_v11 }
  0x46   : > { %553 = vmatpush.bf16.msra.mxu2 %v1388_v12 }
  0x48   : > { %390 = vmatpush.bf16.msra.mxu0 %v1371_v13 }
  0x49   : > { %472 = vmatpush.bf16.msra.mxu1 %v1379_v14 }
  0x4a   : > { %554 = vmatpush.bf16.msra.mxu2 %v1387_v15 }
  0x4c   : > { %391 = vmatpush.bf16.msra.mxu0 %v1370_v16 }
  0x4d   : > { %473 = vmatpush.bf16.msra.mxu1 %v1378_v17 }
  0x4e   : > { %555 = vmatpush.bf16.msra.mxu2 %v1386_v18 }
  0x50   : > { %392 = vmatpush.bf16.msra.mxu0 %v1369_v19 }
  0x51   : > { %474 = vmatpush.bf16.msra.mxu1 %v1377_v20 }
  0x52   : > { %556 = vmatpush.bf16.msra.mxu2 %v1385_v21 }
  0x54   : > { %393 = vmatpush.bf16.msra.mxu0 %v1368_v22 }
  0x55   : > { %475 = vmatpush.bf16.msra.mxu1 %v1376_v23 }
  0x56   : > { %557 = vmatpush.bf16.msra.mxu2 %v1384_v24 }
  0x57   : > { %394 = vmatmul.bf16.vlgmr.msra.gmra.mxu0 %v1367_v25 }
  0x58   : > { %476 = vmatmul.bf16.vlgmr.msra.gmra.mxu1 %v1367_v25 }
  0x59   : > { %558 = vmatmul.bf16.vlgmr.msra.gmra.mxu2 %v1367_v25 }
  0xd4   : > { %v395_v26 = vpop.f32.mrf.mxu0 }
  0xd5   : > { %v477_v27 = vpop.f32.mrf.mxu1 }
  0xdc   : > { %v559_v28 = vpop.f32.mrf.mxu2  ;;  %v397_v29 = vpop.f32.mrf.mxu0 }
  0xdd   : > { %v479_v30 = vpop.f32.mrf.mxu1  ;;  %v1412_v31 = vpack.c.bf16 %v397_v29, %v395_v26 }
  0xde   : > { %v1417_v32 = vpack.c.bf16 %v479_v30, %v477_v27 }
  0xdf   : > { %1413 = vst [vmem:[#allocation2] sm:$0xff] %v1412_v31  }
  0xe0   : > { %1418 = vst [vmem:[#allocation3] sm:$0xff] %v1417_v32  }
  0xe4   : > { %v561_v33 = vpop.f32.mrf.mxu2 }
  0xe5   : > { %v1422_v34 = vpack.c.bf16 %v561_v33, %v559_v28 }
  0xe7   : > { %1423 = vst [vmem:[#allocation4] sm:$0xff] %v1422_v34  }
  0xe8 LB: >> { %s1284_s30 = sshll.u32 %s1776_s12, 3  ;;  %vm587_vm0 = vcmask 64512   ;;  %s1785_s23 = smov 112   ;;  %vm622_vm1 = vcmask 1043456   ;;  %vm640_vm2 = vcmask 60416   ;;  %vm715_vm3 = vcmask 126016   ;;  %s1776_s12 = sphi %s1974_s12, %s574_s12  }
  0xe9   : >> { %s576_s6 = sshra.s32 %s1284_s30, 3  ;;  %s1786_s26 = smov 104   ;;  %vm790_vm4 = vcmask 191616   ;;  %vm865_vm5 = vcmask 257216  }
  0xea   : >> { %s1980_s8 = sshll.u32 %s576_s6, 2  ;;  %s1787_s27 = smov 120  }
  0xeb   : >> { %s582_s10 = scalar_lea.vmem [#allocation3], %s1980_s8  ;;  %s1985_s16 = scalar_lea.vmem [#allocation2], %s1980_s8 }
  0xec   : >> { %v583_v35 = vld [vmem:[%s582_s10] sm:$0xf]  ;;  %s2003_s7 = scalar_lea.vmem [#allocation4], %s1980_s8  ;;  %s1788_s13 = smov 8  }
  0xed   : >> { %v592_v36 = vsel %vm587_vm0, %v583_v35, 0  ;;  %v580_v37 = vld [vmem:[%s1985_s16] sm:$0xf]  ;;  %s1789_s11 = smov 16   ;;  %s1790_s17 = smov 24  }
  0xee   : >> { %601 = vmatpush.bf16.xpose.msra.mxu0 %v592_v36  ;;  %v718_v38 = vld [vmem:[%s582_s10] sm:$0xf]  ;;  %s869_s29 = scalar_lea.vmem [#allocation6], %s1980_s8  ;;  %s574_s12 = sadd.s32 1, %s1776_s12  }
  0xef   : >> { %v726_v39 = vunpack.c.l.b16 %v718_v38  ;;  %v793_v40 = vld [vmem:[%s582_s10] sm:$0xf]  ;;  %p571_p1 = scmp.ge.s32.totalorder %s574_s12, 2  }
  0xf0   : >> { %v801_v42 = vunpack.c.l.b16 %v793_v40  ;;  %v717_v44 = vld [vmem:[%s1985_s16] sm:$0xf]  ;;  %s1408_s12 = sshll.u32 (%p571_p1), %s1842_s22, 4 }
  0xf1   : >> { %v727_v41 = vpack.c.b16 %v726_v39, %v726_v39  ;;  %v721_v45 = vunpack.c.l.b16 %v717_v44  ;;  %v792_v47 = vld [vmem:[%s1985_s16] sm:$0xf]  ;;  %s1041_s8 = scalar_lea.hbm (%p571_p1), %s2075_s5, %s1408_s12 }
  0xf2   : >> { %v802_v43 = vpack.c.b16 %v801_v42, %v801_v42  ;;  %v796_v48 = vunpack.c.l.b16 %v792_v47  ;;  %v643_v53 = vld [vmem:[%s582_s10] sm:$0xf]  ;;  %s1043_s10 = sshll.u32 (%p571_p1), %s1972_s24, 4  ;;  %s1044_s10 = int_to_ptr.vmem [resolvable:$true] %s1043_s10 }
  0xf3   : >> { %728 = vrot.lane.b32.xlu2 %v727_v41, %s1785_s23  ;;  %v722_v46 = vpack.c.b16 %v721_v45, %v721_v45  ;;  %v651_v54 = vunpack.c.l.b16 %v643_v53  ;;  %v642_v2 = vld [vmem:[%s1985_s16] sm:$0xf]  ;;  %s1045_s16 = sshll.u32 (%p571_p1), %s1041_s8, 4  ;;  %s1046_s16 = int_to_ptr.hbm [resolvable:$true] %s1045_s16 }
  0xf4   : >> { %v797_v51 = vpack.c.b16 %v796_v48, %v796_v48  ;;  %v646_v3 = vunpack.c.l.b16 %v642_v2  ;;  %v586_v5 = vld [vmem:[%s2003_s7] sm:$0xf] }
  0xf5   : >> { %1288 = vmatmul.msk.bf16.vlgmr.msra.gmra.mxu0 %vm587_vm0, %v580_v37  ;;  %v652_v55 = vpack.c.b16 %v651_v54, %v651_v54  ;;  %v624_v6 = vsel %vm622_vm1, %v586_v5, 0  ;;  %v644_v37 = vld [vmem:[%s2003_s7] sm:$0xf] }
  0xf6   : >> { %v647_v4 = vpack.c.b16 %v646_v3, %v646_v3  ;;  %633 = vmatpush.bf16.msra.mxu1 %v624_v6  ;;  %v687_v39 = vunpack.c.l.b16 %v644_v37  ;;  %v719_v45 = vld [vmem:[%s2003_s7] sm:$0xf] }
  0xf7   : >> { %v794_v47 = vld [vmem:[%s2003_s7] sm:$0xf] }
  0xf8   : >> { %v688_v41 = vpack.c.b16 %v687_v39, %v687_v39 }
  0xfb   : >> { %803 = vrot.lane.b32.xlu2 %v802_v43, %s1786_s26 }
 0x103   : >> { %723 = vrot.lane.b32.xlu2 %v722_v46, %s1785_s23  ;;  %v762_v46 = vunpack.c.l.b16 %v719_v45 }
 0x105   : >> { %v763_v48 = vpack.c.b16 %v762_v46, %v762_v46 }
 0x10b   : >> { %798 = vrot.lane.b32.xlu2 %v797_v51, %s1786_s26 }
 0x14d   : >> { %v729_v56 = vpop.permute.xlu2 %728 }
 0x14e   : >> { %v734_v7 = vsel %vm587_vm0, %v729_v56, 0 }
 0x14f   : >> { %743 = vmatpush.bf16.xpose.msrb.mxu1 %v734_v7 }
 0x155   : >> { %v804_v57 = vpop.permute.xlu2 %803 }
 0x156   : >> { %v809_v62 = vsel %vm587_vm0, %v804_v57, 0 }
 0x157   : >> { %818 = vmatpush.bf16.xpose.msrb.mxu0 %v809_v62 }
 0x15d   : >> { %v724_v61 = vpop.permute.xlu2 %723 }
 0x165   : >> { %v799_v1 = vpop.permute.xlu2 %798 }
 0x166   : >> { %1294 = vmatmul.msk.bf16.vlgmr.msrb.gmra.mxu0 %vm587_vm0, %v799_v1 }
 0x172   : >> { %v603_v49 = vpop.f32.mrf.mxu0 }
 0x173   : >> { %v607_v50 = vsel %vm587_vm0, %v603_v49, -inf }
 0x174   : >> { %608 = vmax.xlane.f32.xlu0 %v607_v50 }
 0x17a   : >> { %v605_v52 = vpop.f32.mrf.mxu0 }
 0x188   : >> { %653 = vrot.lane.b32.xlu0 %v652_v55, %s1787_s27 }
 0x1e3   : >> { %v820_v14 = vpop.f32.mrf.mxu0 }
 0x1e4   : >> { %v824_v15 = vsel %vm587_vm0, %v820_v14, -inf }
 0x1e7   : >> { %v609_v58 = vpop.xlane.xlu0 %608 }
 0x1e8   : >> { %v610_v59 = vsub.f32 %v603_v49, %v609_v58  ;;  %v837_v49 = vunpack.c.l.b16 %v794_v47 }
 0x1ea   : >> { %v611_v60 = vmul.f32 1.442695, %v610_v59  ;;  %v838_v50 = vpack.c.b16 %v837_v49, %v837_v49 }
 0x1eb   : >> { %v822_v16 = vpop.f32.mrf.mxu0 }
 0x1ec   : >> { %1528 = vpow2.f32 %v611_v60 }
 0x1f2   : >> { %v1529_v63 = vpop.eup %1528 }
 0x1f3   : >> { %v613_v0 = vsel %vm587_vm0, %v1529_v63, 0.0 }
 0x1f4   : >> { %614 = vadd.xlane.f32.xlu1 %v613_v0 }
 0x1fa   : >> { %v654_v8 = vpop.permute.xlu0 %653 }
 0x1fb   : >> { %v659_v9 = vsel %vm587_vm0, %v654_v8, 0 }
 0x1fc   : >> { %668 = vmatpush.bf16.xpose.msra.mxu2 %v659_v9 }
 0x20d   : >> { %648 = vrot.lane.b32.xlu1 %v647_v4, %s1787_s27 }
 0x237   : >> { %825 = vmax.xlane.f32.xlu1 %v824_v15 }
 0x267   : >> { %v615_v10 = vpop.xlane.xlu1 %614 }
 0x268   : >> { %1530 = vrcp.f32 %v615_v10 }
 0x26e   : >> { %v1531_v11 = vpop.eup %1530 }
 0x26f   : >> { %v617_v12 = vmul.f32 %v1531_v11, %v1529_v63 }
 0x271   : >> { %v618_v13 = vpack.c.bf16 %v617_v12, %v617_v12 }
 0x273   : >> { %1289 = vmatmul.msk.bf16.vlgmr.msra.gmra.mxu1 %vm587_vm0, %v618_v13 }
 0x27f   : >> { %v649_v17 = vpop.permute.xlu1 %648 }
 0x280   : >> { %1290 = vmatmul.msk.bf16.vlgmr.msra.gmra.mxu2 %vm587_vm0, %v649_v17 }
 0x283   : >> { %1292 = vmatmul.msk.bf16.vlgmr.msrb.gmra.mxu1 %vm587_vm0, %v724_v61 }
 0x2aa   : >> { %v826_v29 = vpop.xlane.xlu1 %825 }
 0x2ab   : >> { %v827_v33 = vsub.f32 %v820_v14, %v826_v29  ;;  %v1402_v29 = vld [vmem:[#allocation15 + $0x10] sm:$0xff] (%p571_p1) }
 0x2ad   : >> { %v828_v35 = vmul.f32 1.442695, %v827_v33  ;;  %v1400_v33 = vld [vmem:[#allocation15] sm:$0xff] (%p571_p1) }
 0x2f0   : >> { %v635_v18 = vpop.f32.mrf.mxu1 }
 0x2f1   : >> { %v639_v19 = vpack.c.bf16 %v635_v18, %v635_v18  ;;  %v1399_v18 = vld [vmem:[#allocation15 + $0x38] sm:$0xff] (%p571_p1) }
 0x2f2   : > { %936 = vmatpush.bf16.msra.mxu0 (%p571_p1), %v1399_v18 }
 0x2f3   : >> { %641 = vst.msk [vmem:[#allocation5] sm:$0xf] %vm640_vm2, %v639_v19  ;;  %v1407_v19 = vld [vmem:[#allocation15 + $0x38] sm:$0xff] (%p571_p1) }
 0x2f4   : > { %1015 = vmatpush.bf16.msra.mxu1 (%p571_p1), %v1407_v19 }
 0x2f8   : >> { %v637_v20 = vpop.f32.mrf.mxu1 }
 0x2f9   : > { %v1398_v20 = vld [vmem:[#allocation15 + $0x30] sm:$0xff] (%p571_p1) }
 0x2fa   : > { %937 = vmatpush.bf16.msra.mxu0 (%p571_p1), %v1398_v20 }
 0x300   : >> { %v745_v21 = vpop.f32.mrf.mxu1 }
 0x301   : >> { %v749_v22 = vsel %vm587_vm0, %v745_v21, -inf }
 0x302   : >> { %750 = vmax.xlane.f32.xlu2 %v749_v22  ;;  %v1397_v22 = vld [vmem:[#allocation15 + $0x28] sm:$0xff] (%p571_p1) }
 0x303   : >> { %v670_v23 = vpop.f32.mrf.mxu2  ;;  %938 = vmatpush.bf16.msra.mxu0 (%p571_p1), %v1397_v22 }
 0x304   : >> { %v674_v24 = vsel %vm587_vm0, %v670_v23, -inf }
 0x305   : >> { %675 = vmax.xlane.f32.xlu0 %v674_v24  ;;  %v1396_v24 = vld [vmem:[#allocation15 + $0x20] sm:$0xff] (%p571_p1) }
 0x307   : > { %939 = vmatpush.bf16.msra.mxu0 (%p571_p1), %v1396_v24 }
 0x308   : >> { %v747_v25 = vpop.f32.mrf.mxu1 }
 0x309   : > { %v1404_v25 = vld [vmem:[#allocation15 + $0x20] sm:$0xff] (%p571_p1) }
 0x30b   : >> { %v672_v26 = vpop.f32.mrf.mxu2 }
 0x30c   : > { %v1395_v26 = vld [vmem:[#allocation15 + $0x18] sm:$0xff] (%p571_p1) }
 0x30d   : > { %940 = vmatpush.bf16.msra.mxu0 (%p571_p1), %v1395_v26 }
 0x31a   : >> { %689 = vrot.lane.b32.xlu2 %v688_v41, %s1787_s27 }
 0x375   : >> { %v751_v27 = vpop.xlane.xlu2 %750 }
 0x376   : >> { %v752_v28 = vsub.f32 %v745_v21, %v751_v27  ;;  %v1406_v21 = vld [vmem:[#allocation15 + $0x30] sm:$0xff] (%p571_p1)  ;;  %v1403_v27 = vld [vmem:[#allocation15 + $0x18] sm:$0xff] (%p571_p1) }
 0x377   : > { %1016 = vmatpush.bf16.msra.mxu1 (%p571_p1), %v1406_v21 }
 0x378   : >> { %v753_v30 = vmul.f32 1.442695, %v752_v28  ;;  %v676_v31 = vpop.xlane.xlu0 %675  ;;  %v1394_v28 = vld [vmem:[#allocation15 + $0x10] sm:$0xff] (%p571_p1) }
 0x379   : >> { %v677_v32 = vsub.f32 %v670_v23, %v676_v31  ;;  %v1405_v23 = vld [vmem:[#allocation15 + $0x28] sm:$0xff] (%p571_p1)  ;;  %941 = vmatpush.bf16.msra.mxu0 (%p571_p1), %v1394_v28 }
 0x37a   : >> { %1532 = vpow2.f32 %v753_v30  ;;  %v1393_v30 = vld [vmem:[#allocation15 + $0x8] sm:$0xff] (%p571_p1) }
 0x37b   : >> { %v678_v34 = vmul.f32 1.442695, %v677_v32  ;;  %1017 = vmatpush.bf16.msra.mxu1 (%p571_p1), %v1405_v23  ;;  %v1401_v31 = vld [vmem:[#allocation15 + $0x8] sm:$0xff] (%p571_p1)  ;;  %v1392_v32 = vld [vmem:[#allocation15] sm:$0xff] (%p571_p1) }
 0x37d   : >> { %1534 = vpow2.f32 %v678_v34  ;;  %v690_v51 = vpop.permute.xlu2 %689  ;;  %942 = vmatpush.bf16.msra.mxu0 (%p571_p1), %v1393_v30 }
 0x37e   : >> { %1536 = vpow2.f32 %v828_v35  ;;  %v695_v52 = vsel %vm622_vm1, %v690_v51, 0 }
 0x37f   : >> { %704 = vmatpush.bf16.msra.mxu3 %v695_v52  ;;  %1018 = vmatpush.bf16.msra.mxu1 (%p571_p1), %v1404_v25 }
 0x380   : >> { %v1533_v36 = vpop.eup %1532 }
 0x381   : >> { %v755_v38 = vsel %vm587_vm0, %v1533_v36, 0.0  ;;  %943 = vmatpush.bf16.msra.mxu0 (%p571_p1), %v1392_v32 }
 0x382   : >> { %756 = vadd.xlane.f32.xlu1 %v755_v38 }
 0x383   : >> { %v1535_v40 = vpop.eup %1534  ;;  %1019 = vmatpush.bf16.msra.mxu1 (%p571_p1), %v1403_v27 }
 0x384   : >> { %v680_v42 = vsel %vm587_vm0, %v1535_v40, 0.0  ;;  %v1537_v43 = vpop.eup %1536 }
 0x385   : >> { %681 = vadd.xlane.f32.xlu0 %v680_v42  ;;  %v830_v44 = vsel %vm587_vm0, %v1537_v43, 0.0 }
 0x387   : > { %1020 = vmatpush.bf16.msra.mxu1 (%p571_p1), %v1402_v29 }
 0x38b   : > { %1021 = vmatpush.bf16.msra.mxu1 (%p571_p1), %v1401_v31 }
 0x38d   : >> { %831 = vadd.xlane.f32.xlu0 %v830_v44 }
 0x38f   : > { %1022 = vmatpush.bf16.msra.mxu1 (%p571_p1), %v1400_v33 }
 0x39b   : >> { %764 = vrot.lane.b32.xlu1 %v763_v48, %s1785_s23  ;;  %s1030_s23 = scalar_lea.sflag (%p571_p1), [#allocation9], %s1950_s28 }
 0x3a1   : >> { %839 = vrot.lane.b32.xlu0 %v838_v50, %s1786_s26  ;;  %s1708_s26 = sshra.s32 (%p571_p1), %s1046_s16, 4  ;;  %s1709_s26 = int_to_ptr.hbm [resolvable:$true] %s1708_s26 }
 0x3a2   : > { %s1710_s27 = scalar_lea.hbm (%p571_p1), %s1709_s26, 16  ;;  %p1715_p2 = scmp.lt.s32.totalorder (%p571_p1), %s1709_s26, %s2075_s5 }
 0x3a3   : > { %p1711_p4 = scmp.ne.s32.totalorder (%p571_p1), %s1709_s26, %s1710_s27 }
 0x3a5   : > { %p1712_p8 = pnand (%p571_p1), %p1711_p4, %p1917_p3 }
 0x3a7   : > { %p1713_p11 = pneg (%p571_p1), %p1712_p8 }
 0x3f5   : >> { %v757_v56 = vpop.xlane.xlu1 %756 }
 0x3f8   : >> { %v682_v53 = vpop.xlane.xlu0 %681 }
 0x3f9   : >> { %1538 = vrcp.f32 %v682_v53 }
 0x3fa   : >> { %1540 = vrcp.f32 %v757_v56 }
 0x3ff   : >> { %v1539_v54 = vpop.eup %1538 }
 0x400   : >> { %v684_v55 = vmul.f32 %v1539_v54, %v1535_v40  ;;  %v832_v58 = vpop.xlane.xlu0 %831  ;;  %v1541_v59 = vpop.eup %1540 }
 0x401   : >> { %1542 = vrcp.f32 %v832_v58  ;;  %v759_v61 = vmul.f32 %v1541_v59, %v1533_v36 }
 0x402   : >> { %v685_v57 = vpack.c.bf16 %v684_v55, %v684_v55 }
 0x403   : >> { %v760_v1 = vpack.c.bf16 %v759_v61, %v759_v61 }
 0x404   : >> { %1291 = vmatmul.msk.bf16.vlgmr.msra.gmra.mxu3 %vm587_vm0, %v685_v57 }
 0x407   : >> { %v1543_v63 = vpop.eup %1542 }
 0x408   : >> { %v834_v0 = vmul.f32 %v1543_v63, %v1537_v43 }
 0x40a   : >> { %v835_v4 = vpack.c.bf16 %v834_v0, %v834_v0 }
 0x40d   : >> { %v765_v60 = vpop.permute.xlu1 %764 }
 0x40e   : >> { %v770_v62 = vsel %vm622_vm1, %v765_v60, 0 }
 0x40f   : >> { %779 = vmatpush.bf16.msrb.mxu3 %v770_v62 }
 0x413   : >> { %v840_v2 = vpop.permute.xlu0 %839 }
 0x414   : >> { %1293 = vmatmul.msk.bf16.vlgmr.msrb.gmra.mxu3 %vm587_vm0, %v760_v1  ;;  %v845_v3 = vsel %vm622_vm1, %v840_v2, 0 }
 0x415   : >> { %854 = vmatpush.bf16.msrb.mxu2 %v845_v3 }
 0x418   : >> { %1295 = vmatmul.msk.bf16.vlgmr.msrb.gmra.mxu2 %vm587_vm0, %v835_v4 }
 0x487   : >> { %v706_v5 = vpop.f32.mrf.mxu3 }
 0x488   : >> { %v710_v6 = vpack.c.bf16 %v706_v5, %v706_v5 }
 0x48a   : >> { %712 = vrot.lane.b32.xlu2 %v710_v6, %s1788_s13  ;;  %s1714_s13 = scalar_lea.hbm (%p571_p1), %s2075_s5, 32 }
 0x48b   : > { %p1716_p9 = scmp.lt.s32.totalorder (%p571_p1), %s1714_s13, %s1710_s27 }
 0x48d   : > { %p1717_p10 = por (%p571_p1), %p1716_p9, %p1715_p2 }
 0x48f   : >> { %v708_v7 = vpop.f32.mrf.mxu3  ;;  %p1718_p12 = pnand (%p571_p1), %p1717_p10, %p1713_p11 }
 0x497   : >> { %v781_v8 = vpop.f32.mrf.mxu3 }
 0x498   : >> { %v785_v9 = vpack.c.bf16 %v781_v8, %v781_v8 }
 0x49a   : >> { %787 = vrot.lane.b32.xlu2 %v785_v9, %s1789_s11 }
 0x49b   : >> { %v856_v10 = vpop.f32.mrf.mxu2 }
 0x49c   : >> { %v860_v11 = vpack.c.bf16 %v856_v10, %v856_v10 }
 0x49e   : >> { %862 = vrot.lane.b32.xlu0 %v860_v11, %s1790_s17 }
 0x49f   : >> { %v783_v12 = vpop.f32.mrf.mxu3 }
 0x4a3   : >> { %v858_v13 = vpop.f32.mrf.mxu2 }
 0x4e4   : >> { %v713_v14 = vpop.permute.xlu2 %712 }
 0x4e5   : >> { %716 = vst.msk [vmem:[#allocation5] sm:$0xf] %vm715_vm3, %v713_v14 }
 0x4f4   : >> { %v788_v15 = vpop.permute.xlu2 %787 }
 0x4f5   : >> { %791 = vst.msk [vmem:[#allocation5] sm:$0xf] %vm790_vm4, %v788_v15 }
 0x510   : >> { %v863_v16 = vpop.permute.xlu0 %862 }
 0x511   : >> { %866 = vst.msk [vmem:[#allocation5] sm:$0xf] %vm865_vm5, %v863_v16 }
 0x515   : > { %573 = sbr.rel (!%p571_p1) target bundleno = 232 (0xe8), region = 112 }
 0x518   : >> { %v867_v17 = vld [vmem:[#allocation5] sm:$0xf] }
 0x519   : >> { %870 = vst [vmem:[%s869_s29] sm:$0xf] %v867_v17 }
 0x520   : > { %v871_v34 = vld [vmem:[#allocation6] sm:$0xf]  ;;  %v950_v35 = vld [vmem:[#allocation6 + $0x4] sm:$0xf] }
 0x521   : > { %944 = vmatmul.bf16.vlgmr.msra.gmra.mxu0 %v871_v34  ;;  %1023 = vmatmul.bf16.vlgmr.msra.gmra.mxu1 %v950_v35 }
 0x59e   : > { %v945_v36 = vpop.f32.mrf.mxu0  ;;  %v1024_v37 = vpop.f32.mrf.mxu1 }
 0x59f   : > { %949 = vst [vmem:[%s1972_s24] sm:$0xff] %v945_v36 }
 0x5a0   : > { %1028 = vst [vmem:[%s1972_s24 + $0x8] sm:$0xff] %v1024_v37 }
 0x5a1   : > { %1721 = shalt.err (!%p1718_p12)
}
 0x5a2   : > { %1442 = dma.vmem_to_hbm [thread:$0]  (%p1917_p3), %s1044_s10, 256, %s1046_s16, %s1030_s23  }
 0x5a6   : > { %v947_v38 = vpop.f32.mrf.mxu0  ;;  %v1026_v39 = vpop.f32.mrf.mxu1 }
 0x5a7 PF: > { %s1057_s28 = sand.u32 1, %s1760_s18   ;;  %p2084_p13 = scmp.ge.s32.totalorder %s1772_s21, 2 }
 0x5a8   : > { %s1058_s24 = scalar_lea.sflag [#allocation9], %s1057_s28 }
 0x5a9   : > { %p1462_p0 = pnand %p2084_p13, %p1856_p6 }
 0x5ab   : > { %p1463_p5 = pneg %p1462_p0 }
 0x5ad   : > { %1755 = dma.done.wait (%p1463_p5), %s1058_s24, 256  }
 0x5ae   : > { %1757 = vsyncadd (%p1463_p5), %s1058_s24, 4294967040  ;;  %p20_p3 = scmp.ge.s32.totalorder %s1907_s9, 4   ;;  %s2085_s18 = smov %s1764_s19 }
 0x5af   : > { %s2086_s19 = smov %s1768_s20  ;;  %s2087_s20 = smov %s1923_s15 }
 0x5b0   : > { %s2088_s21 = smov %s1907_s9  ;;  %22 = sbr.rel (!%p20_p3) target bundleno = 7 (0x7), region = 123 }
 0x5b5   :  { %1064 = vsyncpa [#allocation8], 1 }
 0x5b6   :  { %1066 = vsyncpa [#allocation8 + $0x1], 1 }
 0x5b7   :  { %1067 = vsyncpa [#allocation11], 1 }
 0x5b8   :  { %1068 = vsyncpa [#allocation14], 1 }
 0x5b9   :  { %1069 = vsyncpa [#allocation9], 1 }
 0x5ba   :  { %1071 = vsyncpa [#allocation9 + $0x1], 1 }

</bundles_post_ra>
